<compile_context>
chip_gen: v7x
topology: tpu7x:2x2x1
jax: 0.10.0
libtpu: 0.0.40
codegen_flags: <defaults>
</compile_context>

<pallas_src>
import functools

import jax
import jax.numpy as jnp
from jax import lax
from jax.experimental import pallas as pl
from jax.experimental.pallas import tpu as pltpu

LN_EPS = 1e-5


# ----------------------------- helpers -----------------------------

def _round_up(x, m):
    return (x + m - 1) // m * m


def _pick_tile(n, cap, mult):
    """Largest multiple of `mult` that divides `n` and is <= cap (falls back to n)."""
    t = min(n, cap)
    t -= t % mult
    while t >= mult:
        if n % t == 0:
            return t
        t -= mult
    return n


# ----------------------------- Pallas kernels -----------------------------

def _ln_matmul_kernel(x_ref, g_ref, be_ref, w_ref, b_ref, o_ref, *, d_actual, act):
    """Fused LayerNorm (over the real d_actual channels) + matmul (+ GELU epilogue)."""
    x = x_ref[...].astype(jnp.float32)                       # (tm, K), padded lanes are 0
    inv_d = 1.0 / d_actual
    mean = jnp.sum(x, axis=-1, keepdims=True) * inv_d
    var = jnp.sum(x * x, axis=-1, keepdims=True) * inv_d - mean * mean
    inv = lax.rsqrt(var + LN_EPS)
    xn = ((x - mean) * inv * g_ref[...] + be_ref[...]).astype(w_ref.dtype)   # bf16 -> MXU
    y = jnp.dot(xn, w_ref[...], preferred_element_type=jnp.float32) + b_ref[...]
    if act == "gelu":
        # TODO(synk): PyTorch nn.GELU default is exact erf; tanh-approx used here (EUP path).
        y = jax.nn.gelu(y, approximate=True)
    o_ref[...] = y.astype(o_ref.dtype)


def ln_matmul(x2d, gamma, beta, w, bias, *, d_actual, act=None, out_dtype=None):
    M, K = x2d.shape
    K2, N = w.shape
    assert K == K2
    out_dtype = out_dtype or x2d.dtype
    tm = _pick_tile(M, 512, 8)
    tn = _pick_tile(N, 512, 128)     # wider N tile -> fewer re-reads of the LN'd row tile
    return pl.pallas_call(
        functools.partial(_ln_matmul_kernel, d_actual=d_actual, act=act),
        out_shape=jax.ShapeDtypeStruct((M, N), out_dtype),
        grid=(M // tm, N // tn),
        in_specs=[
            pl.BlockSpec((tm, K), lambda i, j: (i, 0)),      # LN needs the full K row
            pl.BlockSpec((1, K), lambda i, j: (0, 0)),
            pl.BlockSpec((1, K), lambda i, j: (0, 0)),
            pl.BlockSpec((K, tn), lambda i, j: (0, j)),
            pl.BlockSpec((1, tn), lambda i, j: (0, j)),
        ],
        out_specs=pl.BlockSpec((tm, tn), lambda i, j: (i, j)),
        compiler_params=pltpu.CompilerParams(
            dimension_semantics=("parallel", "parallel")),
    )(x2d, gamma.reshape(1, K), beta.reshape(1, K), w, bias.reshape(1, N))


def _matmul_res_kernel(x_ref, w_ref, b_ref, r_ref, o_ref, acc_ref):
    """K-tiled matmul with f32 VMEM accumulator; bias + residual add in the epilogue."""
    @pl.when(pl.program_id(2) == 0)
    def _():
        acc_ref[...] = jnp.zeros_like(acc_ref)

    acc_ref[...] += jnp.dot(x_ref[...], w_ref[...], preferred_element_type=jnp.float32)

    @pl.when(pl.program_id(2) == pl.num_programs(2) - 1)
    def _():
        y = acc_ref[...] + b_ref[...] + r_ref[...].astype(jnp.float32)
        o_ref[...] = y.astype(o_ref.dtype)


def matmul_residual(x2d, w, bias, res2d):
    M, K = x2d.shape
    K2, N = w.shape
    assert K == K2
    tm = _pick_tile(M, 512, 8)
    tn = _pick_tile(N, 256, 128)
    tk = _pick_tile(K, 512, 128)
    return pl.pallas_call(
        _matmul_res_kernel,
        out_shape=jax.ShapeDtypeStruct((M, N), res2d.dtype),
        grid=(M // tm, N // tn, K // tk),
        in_specs=[
            pl.BlockSpec((tm, tk), lambda i, j, k: (i, k)),
            pl.BlockSpec((tk, tn), lambda i, j, k: (k, j)),
            pl.BlockSpec((1, tn), lambda i, j, k: (0, j)),
            pl.BlockSpec((tm, tn), lambda i, j, k: (i, j)),
        ],
        out_specs=pl.BlockSpec((tm, tn), lambda i, j, k: (i, j)),
        scratch_shapes=[pltpu.VMEM((tm, tn), jnp.float32)],
        compiler_params=pltpu.CompilerParams(
            dimension_semantics=("parallel", "parallel", "arbitrary")),
    )(x2d, w, bias.reshape(1, N), res2d)


def _gate_matmul_kernel(yf_ref, v_ref, x0_ref, kb_ref, w_ref, b_ref, r_ref, o_ref):
    """Fused second Hyena gate ((y_fft + kb*v) * x0) + out_proj + residual add."""
    v = v_ref[...].astype(jnp.float32)
    y = (yf_ref[...].astype(jnp.float32) + kb_ref[...] * v) * x0_ref[...].astype(jnp.float32)
    y = y.astype(w_ref.dtype)                                 # bf16 -> MXU
    out = (jnp.dot(y, w_ref[...], preferred_element_type=jnp.float32)
           + b_ref[...] + r_ref[...].astype(jnp.float32))
    o_ref[...] = out.astype(o_ref.dtype)


def gate_matmul_residual(y_fft2d, v2d, x02d, kb, w, bias, res2d):
    M, K = v2d.shape
    K2, N = w.shape
    assert K == K2
    tm = _pick_tile(M, 512, 8)
    tn = _pick_tile(N, 256, 128)
    return pl.pallas_call(
        _gate_matmul_kernel,
        out_shape=jax.ShapeDtypeStruct((M, N), res2d.dtype),
        grid=(M // tm, N // tn),
        in_specs=[
            pl.BlockSpec((tm, K), lambda i, j: (i, 0)),
            pl.BlockSpec((tm, K), lambda i, j: (i, 0)),
            pl.BlockSpec((tm, K), lambda i, j: (i, 0)),
            pl.BlockSpec((1, K), lambda i, j: (0, 0)),
            pl.BlockSpec((K, tn), lambda i, j: (0, j)),
            pl.BlockSpec((1, tn), lambda i, j: (0, j)),
            pl.BlockSpec((tm, tn), lambda i, j: (i, j)),
        ],
        out_specs=pl.BlockSpec((tm, tn), lambda i, j: (i, j)),
        compiler_params=pltpu.CompilerParams(
            dimension_semantics=("parallel", "parallel")),
    )(y_fft2d, v2d, x02d, kb.reshape(1, K), w, bias.reshape(1, N), res2d)


def _short_conv_gate_kernel(u_ref, halo_ref, sw_ref, sb_ref, v_ref, x0_ref, *, dp):
    """Depthwise causal short conv (k=3, PyTorch Conv1d padding=2 truncated to L) + gate1.

    Chunked over the sequence; `halo_ref` holds the last 8 rows of the previous chunk
    (zeroed for the first chunk) to supply the 2-row causal overlap.
    """
    u = u_ref[0].astype(jnp.float32)                          # (tL, 3*Dp)
    halo = halo_ref[0].astype(jnp.float32)                    # (8,  3*Dp)
    halo = halo * (pl.program_id(1) > 0).astype(jnp.float32)  # zero halo for first chunk
    row = lax.broadcasted_iota(jnp.int32, u.shape, 0)         # hoisted once

    # conv[t,c] = w0[c]*x[t-2,c] + w1[c]*x[t-1,c] + w2[c]*x[t,c] + b[c]
    um1 = jnp.where(row >= 1, pltpu.roll(u, shift=1, axis=0), halo[7:8, :])
    f2 = jnp.where(row == 0, halo[6:7, :], halo[7:8, :])
    um2 = jnp.where(row >= 2, pltpu.roll(u, shift=2, axis=0), f2)

    sw = sw_ref[...].astype(jnp.float32)                      # (3, 3*Dp)
    sb = sb_ref[...].astype(jnp.float32)                      # (1, 3*Dp)
    conv = sw[0:1, :] * um2 + sw[1:2, :] * um1 + sw[2:3, :] * u + sb

    x0 = conv[:, 0:dp]
    x1 = conv[:, dp:2 * dp]
    v = conv[:, 2 * dp:3 * dp] * x1                           # first Hyena gate
    v_ref[0] = v.astype(v_ref.dtype)
    x0_ref[0] = x0.astype(x0_ref.dtype)


def short_conv_gate(u, sc_w, sc_b, dp):
    B, L, C = u.shape
    assert C == 3 * dp and L % 8 == 0
    tl = _pick_tile(L, 1024, 8)                               # sequence chunk (VMEM-friendly)
    nl = L // tl
    hpc = tl // 8                                             # halo blocks (8 rows) per chunk
    return pl.pallas_call(
        functools.partial(_short_conv_gate_kernel, dp=dp),
        out_shape=(jax.ShapeDtypeStruct((B, L, dp), u.dtype),
                   jax.ShapeDtypeStruct((B, L, dp), u.dtype)),
        grid=(B, nl),
        in_specs=[
            pl.BlockSpec((1, tl, C), lambda b, l: (b, l, 0)),
            # last 8 rows of the previous chunk (clamped to chunk 0; masked in-kernel)
            pl.BlockSpec((1, 8, C), lambda b, l: (b, jnp.maximum(l * hpc - 1, 0), 0)),
            pl.BlockSpec((3, C), lambda b, l: (0, 0)),
            pl.BlockSpec((1, C), lambda b, l: (0, 0)),
        ],
        out_specs=(pl.BlockSpec((1, tl, dp), lambda b, l: (b, l, 0)),
                   pl.BlockSpec((1, tl, dp), lambda b, l: (b, l, 0))),
        compiler_params=pltpu.CompilerParams(
            dimension_semantics=("parallel", "parallel")),
    )(u, u, sc_w, sc_b.reshape(1, C))


def _layernorm_kernel(x_ref, g_ref, b_ref, o_ref, *, d_actual):
    x = x_ref[...].astype(jnp.float32)
    inv_d = 1.0 / d_actual
    mean = jnp.sum(x, axis=-1, keepdims=True) * inv_d
    var = jnp.sum(x * x, axis=-1, keepdims=True) * inv_d - mean * mean
    inv = lax.rsqrt(var + LN_EPS)
    o_ref[...] = ((x - mean) * inv * g_ref[...] + b_ref[...]).astype(o_ref.dtype)


def layernorm(x2d, gamma, beta, *, d_actual, out_dtype=jnp.float32):
    M, D = x2d.shape
    tm = _pick_tile(M, 1024, 8)
    return pl.pallas_call(
        functools.partial(_layernorm_kernel, d_actual=d_actual),
        out_shape=jax.ShapeDtypeStruct((M, D), out_dtype),
        grid=(M // tm,),
        in_specs=[
            pl.BlockSpec((tm, D), lambda i: (i, 0)),
            pl.BlockSpec((1, D), lambda i: (0, 0)),
            pl.BlockSpec((1, D), lambda i: (0, 0)),
        ],
        out_specs=pl.BlockSpec((tm, D), lambda i: (i, 0)),
        compiler_params=pltpu.CompilerParams(dimension_semantics=("parallel",)),
    )(x2d, gamma.reshape(1, D), beta.reshape(1, D))


# ----------------------------- XLA glue (no clean Pallas equivalent) -----------------------------

def fft_causal_conv(v, k):
    """y[b,t,d] = sum_{tau<=t} k[tau,d] * v[b,t-tau,d]  via FFT, O(L log L)."""
    B, L, D = v.shape
    n = pl.next_power_of_2(2 * L - 1)                         # pow-2 FFT, no circular aliasing
    vf = jnp.fft.rfft(v.astype(jnp.float32), n=n, axis=1)
    kf = jnp.fft.rfft(k.astype(jnp.float32), n=n, axis=0)
    return jnp.fft.irfft(vf * kf[None, :, :], n=n, axis=1)[:, :L, :]


# ----------------------------- parameters -----------------------------

def init_params(key, *, vocab=16, d_model=32, n_layer=2, l_max=8):
    keys = jax.random.split(key, 1 + 12 * n_layer)
    it = iter(range(len(keys)))
    scale = 0.02

    def nrm(shape):
        return scale * jax.random.normal(keys[next(it)], shape, dtype=jnp.float32)

    params = {
        "emb": nrm((vocab, d_model)),
        "lnf_g": jnp.ones((d_model,), jnp.float32),
        "lnf_b": jnp.zeros((d_model,), jnp.float32),
        "layers": [],
    }
    for _ in range(n_layer):
        lp = {
            "ln1_g": jnp.ones((d_model,), jnp.float32),
            "ln1_b": jnp.zeros((d_model,), jnp.float32),
            "in_w": nrm((d_model, 3 * d_model)),
            "in_b": jnp.zeros((3 * d_model,), jnp.float32),
            "sc_w": nrm((3, 3 * d_model)),                    # short depthwise conv taps
            "sc_b": jnp.zeros((3 * d_model,), jnp.float32),
            "k": nrm((l_max, d_model)),                       # materialized long implicit filter
            "kb": nrm((d_model,)),                            # long-conv skip bias
            "out_w": nrm((d_model, d_model)),
            "out_b": jnp.zeros((d_model,), jnp.float32),
            "ln2_g": jnp.ones((d_model,), jnp.float32),
            "ln2_b": jnp.zeros((d_model,), jnp.float32),
            "fc1_w": nrm((d_model, 4 * d_model)),
            "fc1_b": jnp.zeros((4 * d_model,), jnp.float32),
            "fc2_w": nrm((4 * d_model, d_model)),
            "fc2_b": jnp.zeros((d_model,), jnp.float32),
        }
        params["layers"].append(lp)
    return params


def _pad_grouped_cols(w, d, dp):
    """Zero-pad each of the 3 size-d channel groups on the last axis to size dp."""
    parts = [w[..., s * d:(s + 1) * d] for s in range(3)]
    pad_width = [(0, 0)] * (w.ndim - 1) + [(0, dp - d)]
    return jnp.concatenate([jnp.pad(p, pad_width) for p in parts], axis=-1)


def pad_params(params, d_model):
    """Lane-dense packing: pad channel dims to multiples of 128; matmul weights -> bf16."""
    D = d_model
    Dp = _round_up(D, 128)
    H = 4 * D
    Hp = _round_up(H, 128)
    pp = {
        "emb": jnp.pad(params["emb"], ((0, 0), (0, Dp - D))),
        "lnf_g": jnp.pad(params["lnf_g"], (0, Dp - D)),
        "lnf_b": jnp.pad(params["lnf_b"], (0, Dp - D)),
        "layers": [],
    }
    for lp in params["layers"]:
        in_w = _pad_grouped_cols(jnp.pad(lp["in_w"], ((0, Dp - D), (0, 0))), D, Dp)
        pp["layers"].append({
            "ln1_g": jnp.pad(lp["ln1_g"], (0, Dp - D)),
            "ln1_b": jnp.pad(lp["ln1_b"], (0, Dp - D)),
            "in_w": in_w.astype(jnp.bfloat16),
            "in_b": _pad_grouped_cols(lp["in_b"], D, Dp),
            "sc_w": _pad_grouped_cols(lp["sc_w"], D, Dp),
            "sc_b": _pad_grouped_cols(lp["sc_b"], D, Dp),
            "k": lp["k"],                                      # (L, D) real channels only (FFT path)
            "kb": jnp.pad(lp["kb"], (0, Dp - D)),
            "out_w": jnp.pad(lp["out_w"], ((0, Dp - D), (0, Dp - D))).astype(jnp.bfloat16),
            "out_b": jnp.pad(lp["out_b"], (0, Dp - D)),
            "ln2_g": jnp.pad(lp["ln2_g"], (0, Dp - D)),
            "ln2_b": jnp.pad(lp["ln2_b"], (0, Dp - D)),
            "fc1_w": jnp.pad(lp["fc1_w"], ((0, Dp - D), (0, Hp - H))).astype(jnp.bfloat16),
            "fc1_b": jnp.pad(lp["fc1_b"], (0, Hp - H)),
            "fc2_w": jnp.pad(lp["fc2_w"], ((0, Hp - H), (0, Dp - D))).astype(jnp.bfloat16),
            "fc2_b": jnp.pad(lp["fc2_b"], (0, Dp - D)),
        })
    return pp


# ----------------------------- forward (Pallas path) -----------------------------

def encoder_forward(tokens, pp, d_model):
    """HyenaDNA backbone forward on padded params; returns last-token embedding (B, d_model)."""
    B, L = tokens.shape
    Dp = pp["emb"].shape[1]
    M = B * L

    # embedding gather = XLA glue; residual stream kept in f32 (padded lanes stay exactly 0)
    resid = jnp.take(pp["emb"], tokens, axis=0)                         # (B, L, Dp) f32

    for lp in pp["layers"]:
        # ---- Hyena mixer sub-block: fused LN1 + in_proj ----
        u = ln_matmul(resid.reshape(M, Dp), lp["ln1_g"], lp["ln1_b"],
                      lp["in_w"], lp["in_b"], d_actual=d_model,
                      out_dtype=jnp.bfloat16).reshape(B, L, 3 * Dp)
        # short depthwise causal conv + first gate (Pallas, chunked over L)
        v, x0 = short_conv_gate(u, lp["sc_w"], lp["sc_b"], Dp)          # (B, L, Dp) bf16
        # long causal conv with the implicit filter -> FFT in XLA on the real channels only
        if Dp != d_model:
            y_fft = fft_causal_conv(v[..., :d_model], lp["k"])          # (B, L, D) f32
            y_fft = jnp.pad(y_fft, ((0, 0), (0, 0), (0, Dp - d_model)))
        else:
            y_fft = fft_causal_conv(v, lp["k"])                         # (B, L, Dp) f32
        # second gate + out_proj + residual add (fused)
        resid = gate_matmul_residual(
            y_fft.reshape(M, Dp), v.reshape(M, Dp), x0.reshape(M, Dp),
            lp["kb"], lp["out_w"], lp["out_b"],
            resid.reshape(M, Dp)).reshape(B, L, Dp)

        # ---- MLP sub-block: fused LN2 + fc1 + GELU, then fc2 + residual add ----
        h = ln_matmul(resid.reshape(M, Dp), lp["ln2_g"], lp["ln2_b"],
                      lp["fc1_w"], lp["fc1_b"], d_actual=d_model,
                      act="gelu", out_dtype=jnp.bfloat16)
        resid = matmul_residual(h, lp["fc2_w"], lp["fc2_b"],
                                resid.reshape(M, Dp)).reshape(B, L, Dp)

    # Encoder.get_dna: model(x)[:, -1, :]  (LN_f is token-wise -> slice first, then LN)
    last = resid[:, -1, :]                                              # (B, Dp)
    out = layernorm(last, pp["lnf_g"], pp["lnf_b"], d_actual=d_model)
    return out[:, :d_model]


# ----------------------------- pure-JAX f32 reference -----------------------------

def encoder_forward_ref(tokens, params):
    D = params["emb"].shape[1]
    B, L = tokens.shape

    def ln(x, g, b):
        m = jnp.mean(x, -1, keepdims=True)
        v = jnp.mean((x - m) ** 2, -1, keepdims=True)
        return (x - m) * lax.rsqrt(v + LN_EPS) * g + b

    hidden = jnp.take(params["emb"], tokens, axis=0)
    residual = None
    for lp in params["layers"]:
        residual = hidden if residual is None else hidden + residual
        h = ln(residual, lp["ln1_g"], lp["ln1_b"])
        u = h @ lp["in_w"] + lp["in_b"]
        up = jnp.pad(u, ((0, 0), (2, 0), (0, 0)))
        conv = (lp["sc_w"][0] * up[:, 0:L] + lp["sc_w"][1] * up[:, 1:L + 1]
                + lp["sc_w"][2] * up[:, 2:L + 2] + lp["sc_b"])
        x0, x1, v = conv[..., :D], conv[..., D:2 * D], conv[..., 2 * D:]
        v = v * x1
        y = (fft_causal_conv(v, lp["k"]) + lp["kb"] * v) * x0
        hidden = y @ lp["out_w"] + lp["out_b"]
        residual = hidden + residual
        h = ln(residual, lp["ln2_g"], lp["ln2_b"])
        h = jax.nn.gelu(h @ lp["fc1_w"] + lp["fc1_b"], approximate=True)
        hidden = h @ lp["fc2_w"] + lp["fc2_b"]
    residual = hidden + residual
    return ln(residual, params["lnf_g"], params["lnf_b"])[:, -1, :]


# ----------------------------- main -----------------------------

if __name__ == "__main__":
    key = jax.random.PRNGKey(0)
    k_tok, k_par = jax.random.split(key)

    B, L, D, VOCAB, NLAYER = 2, 8, 32, 16, 2
    params = init_params(k_par, vocab=VOCAB, d_model=D, n_layer=NLAYER, l_max=L)
    tokens = jax.random.randint(k_tok, (B, L), 0, VOCAB, dtype=jnp.int32)

    padded = pad_params(params, D)
    fwd = jax.jit(functools.partial(encoder_forward, d_model=D))

    out = fwd(tokens, padded)
    out = jax.block_until_ready(out)
    assert out.shape == (B, D)
    assert bool(jnp.all(jnp.isfinite(out)))

    # correctness vs pure-JAX f32 reference (bf16 MXU path => loose tolerance)
    ref = encoder_forward_ref(tokens, params)
    err = float(jnp.max(jnp.abs(out.astype(jnp.float32) - ref)))
    assert err < 0.2, f"mismatch vs reference: max abs err = {err}"

    print("KERNEL_OK")
</pallas_src>

<mosaic_0001>
module attributes {stable_mosaic.version = 11 : i64} {
  func.func @_ln_matmul_kernel(%arg0: i32, %arg1: i32, %arg2: memref<16x128xf32, #tpu.memory_space<vmem>>, %arg3: memref<1x128xf32, #tpu.memory_space<vmem>>, %arg4: memref<1x128xf32, #tpu.memory_space<vmem>>, %arg5: memref<128x384xbf16, #tpu.memory_space<vmem>>, %arg6: memref<1x384xf32, #tpu.memory_space<vmem>>, %arg7: memref<16x384xbf16, #tpu.memory_space<vmem>>) attributes {dimension_semantics = [#tpu.dimension_semantics<parallel>, #tpu.dimension_semantics<parallel>], iteration_bounds = array<i64: 1, 1>, scalar_prefetch = 0 : i64, scratch_operands = 0 : i64, tpu.core_type = #tpu.core_type<tc>, window_params = [{transform_indices = @transform_0, window_bounds = array<i64: 16, 128>}, {pipeline_mode = #tpu.pipeline_mode<synchronous>, transform_indices = @transform_1, window_bounds = array<i64: 1, 128>}, {pipeline_mode = #tpu.pipeline_mode<synchronous>, transform_indices = @transform_2, window_bounds = array<i64: 1, 128>}, {transform_indices = @transform_3, window_bounds = array<i64: 128, 384>}, {transform_indices = @transform_4, window_bounds = array<i64: 1, 384>}, {transform_indices = @transform_5, window_bounds = array<i64: 16, 384>}]} {
    %c0 = arith.constant 0 : index
    %c0_0 = arith.constant 0 : index
    %0 = vector.load %arg2[%c0, %c0_0] : memref<16x128xf32, #tpu.memory_space<vmem>>, vector<16x128xf32>
    %cst = arith.constant dense<0.000000e+00> : vector<16xf32>
    %1 = vector.multi_reduction <add>, %0, %cst [1] : vector<16x128xf32> to vector<16xf32>
    %2 = vector.shape_cast %1 : vector<16xf32> to vector<16x1xf32>
    %cst_1 = arith.constant 3.125000e-02 : f32
    %3 = vector.broadcast %cst_1 : f32 to vector<16x1xf32>
    %4 = arith.mulf %2, %3 : vector<16x1xf32>
    %5 = arith.mulf %0, %0 : vector<16x128xf32>
    %cst_2 = arith.constant dense<0.000000e+00> : vector<16xf32>
    %6 = vector.multi_reduction <add>, %5, %cst_2 [1] : vector<16x128xf32> to vector<16xf32>
    %7 = vector.shape_cast %6 : vector<16xf32> to vector<16x1xf32>
    %cst_3 = arith.constant 3.125000e-02 : f32
    %8 = vector.broadcast %cst_3 : f32 to vector<16x1xf32>
    %9 = arith.mulf %7, %8 : vector<16x1xf32>
    %10 = arith.mulf %4, %4 : vector<16x1xf32>
    %11 = arith.subf %9, %10 : vector<16x1xf32>
    %cst_4 = arith.constant 9.99999974E-6 : f32
    %12 = vector.broadcast %cst_4 : f32 to vector<16x1xf32>
    %13 = arith.addf %11, %12 : vector<16x1xf32>
    %14 = math.rsqrt %13 : vector<16x1xf32>
    %15 = vector.broadcast %4 : vector<16x1xf32> to vector<16x128xf32>
    %16 = arith.subf %0, %15 : vector<16x128xf32>
    %17 = vector.broadcast %14 : vector<16x1xf32> to vector<16x128xf32>
    %18 = arith.mulf %16, %17 : vector<16x128xf32>
    %c0_5 = arith.constant 0 : index
    %c0_6 = arith.constant 0 : index
    %19 = vector.load %arg3[%c0_5, %c0_6] : memref<1x128xf32, #tpu.memory_space<vmem>>, vector<1x128xf32>
    %20 = vector.broadcast %19 : vector<1x128xf32> to vector<16x128xf32>
    %21 = arith.mulf %18, %20 : vector<16x128xf32>
    %c0_7 = arith.constant 0 : index
    %c0_8 = arith.constant 0 : index
    %22 = vector.load %arg4[%c0_7, %c0_8] : memref<1x128xf32, #tpu.memory_space<vmem>>, vector<1x128xf32>
    %23 = vector.broadcast %22 : vector<1x128xf32> to vector<16x128xf32>
    %24 = arith.addf %21, %23 : vector<16x128xf32>
    %25 = arith.truncf %24 : vector<16x128xf32> to vector<16x128xbf16>
    %c0_9 = arith.constant 0 : index
    %c0_10 = arith.constant 0 : index
    %26 = vector.load %arg5[%c0_9, %c0_10] : memref<128x384xbf16, #tpu.memory_space<vmem>>, vector<128x384xbf16>
    %cst_11 = arith.constant dense<0.000000e+00> : vector<16x384xf32>
    %27 = tpu.matmul %25, %26, %cst_11 {dimension_numbers = #tpu.dot_dimension_numbers<[1], [0], [0], [1], [0, 0, 1, 1], [], []>} : vector<16x128xbf16>, vector<128x384xbf16>, vector<16x384xf32> -> vector<16x384xf32>
    %c0_12 = arith.constant 0 : index
    %c0_13 = arith.constant 0 : index
    %28 = vector.load %arg6[%c0_12, %c0_13] : memref<1x384xf32, #tpu.memory_space<vmem>>, vector<1x384xf32>
    %29 = vector.broadcast %28 : vector<1x384xf32> to vector<16x384xf32>
    %30 = arith.addf %27, %29 : vector<16x384xf32>
    %31 = arith.truncf %30 : vector<16x384xf32> to vector<16x384xbf16>
    %c0_14 = arith.constant 0 : index
    %c0_15 = arith.constant 0 : index
    %32 = vector.load %arg7[%c0_14, %c0_15] : memref<16x384xbf16, #tpu.memory_space<vmem>>, vector<16x384xbf16>
    tpu.vector_store %arg7[%c0_14, %c0_15], %31 {strides = array<i32>} : memref<16x384xbf16, #tpu.memory_space<vmem>>, vector<16x384xbf16>,
    return
  }
  func.func @transform_0(%arg0: i32, %arg1: i32) -> (i32, i32) {
    %c0_i32 = arith.constant 0 : i32
    %c0_i32_0 = arith.constant 0 : i32
    return %arg0, %c0_i32 : i32, i32
  }
  func.func @transform_1(%arg0: i32, %arg1: i32) -> (i32, i32) {
    %c0_i32 = arith.constant 0 : i32
    %c0_i32_0 = arith.constant 0 : i32
    %c0_i32_1 = arith.constant 0 : i32
    return %c0_i32, %c0_i32_0 : i32, i32
  }
  func.func @transform_2(%arg0: i32, %arg1: i32) -> (i32, i32) {
    %c0_i32 = arith.constant 0 : i32
    %c0_i32_0 = arith.constant 0 : i32
    %c0_i32_1 = arith.constant 0 : i32
    return %c0_i32, %c0_i32_0 : i32, i32
  }
  func.func @transform_3(%arg0: i32, %arg1: i32) -> (i32, i32) {
    %c0_i32 = arith.constant 0 : i32
    %c0_i32_0 = arith.constant 0 : i32
    return %c0_i32, %arg1 : i32, i32
  }
  func.func @transform_4(%arg0: i32, %arg1: i32) -> (i32, i32) {
    %c0_i32 = arith.constant 0 : i32
    %c0_i32_0 = arith.constant 0 : i32
    return %c0_i32, %arg1 : i32, i32
  }
  func.func @transform_5(%arg0: i32, %arg1: i32) -> (i32, i32) {
    %c0_i32 = arith.constant 0 : i32
    return %arg0, %arg1 : i32, i32
  }
}

module attributes {stable_mosaic.version = 11 : i64} {
  func.func @_short_conv_gate_kernel(%arg0: i32, %arg1: i32, %arg2: memref<1x8x384xbf16, #tpu.memory_space<vmem>>, %arg3: memref<1x8x384xbf16, #tpu.memory_space<vmem>>, %arg4: memref<3x384xf32, #tpu.memory_space<vmem>>, %arg5: memref<1x384xf32, #tpu.memory_space<vmem>>, %arg6: memref<1x8x128xbf16, #tpu.memory_space<vmem>>, %arg7: memref<1x8x128xbf16, #tpu.memory_space<vmem>>) attributes {dimension_semantics = [#tpu.dimension_semantics<parallel>, #tpu.dimension_semantics<parallel>], iteration_bounds = array<i64: 2, 1>, scalar_prefetch = 0 : i64, scratch_operands = 0 : i64, tpu.core_type = #tpu.core_type<tc>, window_params = [{transform_indices = @transform_0, window_bounds = array<i64: 1, 8, 384>}, {transform_indices = @transform_1, window_bounds = array<i64: 1, 8, 384>}, {pipeline_mode = #tpu.pipeline_mode<synchronous>, transform_indices = @transform_2, window_bounds = array<i64: 3, 384>}, {pipeline_mode = #tpu.pipeline_mode<synchronous>, transform_indices = @transform_3, window_bounds = array<i64: 1, 384>}, {transform_indices = @transform_4, window_bounds = array<i64: 1, 8, 128>}, {transform_indices = @transform_5, window_bounds = array<i64: 1, 8, 128>}]} {
    %c0 = arith.constant 0 : index
    %c0_0 = arith.constant 0 : index
    %c0_1 = arith.constant 0 : index
    %0 = vector.load %arg2[%c0, %c0_0, %c0_1] : memref<1x8x384xbf16, #tpu.memory_space<vmem>>, vector<1x8x384xbf16>
    %1 = vector.shape_cast %0 : vector<1x8x384xbf16> to vector<8x384xbf16>
    %2 = arith.extf %1 : vector<8x384xbf16> to vector<8x384xf32>
    %c0_2 = arith.constant 0 : index
    %c0_3 = arith.constant 0 : index
    %c0_4 = arith.constant 0 : index
    %3 = vector.load %arg3[%c0_2, %c0_3, %c0_4] : memref<1x8x384xbf16, #tpu.memory_space<vmem>>, vector<1x8x384xbf16>
    %4 = vector.shape_cast %3 : vector<1x8x384xbf16> to vector<8x384xbf16>
    %5 = arith.extf %4 : vector<8x384xbf16> to vector<8x384xf32>
    %c0_i32 = arith.constant 0 : i32
    %6 = arith.cmpi sgt, %arg1, %c0_i32 : i32
    %7 = arith.extui %6 : i1 to i32
    %8 = arith.sitofp %7 : i32 to f32
    %9 = vector.broadcast %8 : f32 to vector<8x384xf32>
    %10 = arith.mulf %5, %9 : vector<8x384xf32>
    %11 = tpu.iota {dimensions = array<i32: 0>} : vector<8x384xi32>
    %c1_i32 = arith.constant 1 : i32
    %12 = vector.broadcast %c1_i32 : i32 to vector<8x384xi32>
    %13 = arith.cmpi sge, %11, %12 : vector<8x384xi32>
    %c1_i32_5 = arith.constant 1 : i32
    %14 = tpu.dynamic_rotate %2 by %c1_i32_5 dim 0 : vector<8x384xf32>, i32 -> vector<8x384xf32>
    %15 = vector.extract_strided_slice %10 {offsets = [7, 0], sizes = [1, 384], strides = [1, 1]} : vector<8x384xf32> to vector<1x384xf32>
    %16 = vector.shape_cast %15 : vector<1x384xf32> to vector<1x384xf32>
    %17 = vector.broadcast %16 : vector<1x384xf32> to vector<8x384xf32>
    %18 = arith.select %13, %14, %17 : vector<8x384xi1>, vector<8x384xf32>
    %c0_i32_6 = arith.constant 0 : i32
    %19 = vector.broadcast %c0_i32_6 : i32 to vector<8x384xi32>
    %20 = arith.cmpi eq, %11, %19 : vector<8x384xi32>
    %21 = vector.extract_strided_slice %10 {offsets = [6, 0], sizes = [1, 384], strides = [1, 1]} : vector<8x384xf32> to vector<1x384xf32>
    %22 = vector.extract_strided_slice %10 {offsets = [7, 0], sizes = [1, 384], strides = [1, 1]} : vector<8x384xf32> to vector<1x384xf32>
    %23 = vector.shape_cast %21 : vector<1x384xf32> to vector<1x384xf32>
    %24 = vector.broadcast %23 : vector<1x384xf32> to vector<8x384xf32>
    %25 = vector.shape_cast %22 : vector<1x384xf32> to vector<1x384xf32>
    %26 = vector.broadcast %25 : vector<1x384xf32> to vector<8x384xf32>
    %27 = arith.select %20, %24, %26 : vector<8x384xi1>, vector<8x384xf32>
    %c2_i32 = arith.constant 2 : i32
    %28 = vector.broadcast %c2_i32 : i32 to vector<8x384xi32>
    %29 = arith.cmpi sge, %11, %28 : vector<8x384xi32>
    %c2_i32_7 = arith.constant 2 : i32
    %30 = tpu.dynamic_rotate %2 by %c2_i32_7 dim 0 : vector<8x384xf32>, i32 -> vector<8x384xf32>
    %31 = arith.select %29, %30, %27 : vector<8x384xi1>, vector<8x384xf32>
    %c0_8 = arith.constant 0 : index
    %c0_9 = arith.constant 0 : index
    %32 = vector.load %arg4[%c0_8, %c0_9] : memref<3x384xf32, #tpu.memory_space<vmem>>, vector<3x384xf32>
    %c0_10 = arith.constant 0 : index
    %c0_11 = arith.constant 0 : index
    %33 = vector.load %arg5[%c0_10, %c0_11] : memref<1x384xf32, #tpu.memory_space<vmem>>, vector<1x384xf32>
    %34 = vector.extract_strided_slice %32 {offsets = [0, 0], sizes = [1, 384], strides = [1, 1]} : vector<3x384xf32> to vector<1x384xf32>
    %35 = vector.broadcast %34 : vector<1x384xf32> to vector<8x384xf32>
    %36 = arith.mulf %35, %31 : vector<8x384xf32>
    %37 = vector.extract_strided_slice %32 {offsets = [1, 0], sizes = [1, 384], strides = [1, 1]} : vector<3x384xf32> to vector<1x384xf32>
    %38 = vector.broadcast %37 : vector<1x384xf32> to vector<8x384xf32>
    %39 = arith.mulf %38, %18 : vector<8x384xf32>
    %40 = arith.addf %36, %39 : vector<8x384xf32>
    %41 = vector.extract_strided_slice %32 {offsets = [2, 0], sizes = [1, 384], strides = [1, 1]} : vector<3x384xf32> to vector<1x384xf32>
    %42 = vector.broadcast %41 : vector<1x384xf32> to vector<8x384xf32>
    %43 = arith.mulf %42, %2 : vector<8x384xf32>
    %44 = arith.addf %40, %43 : vector<8x384xf32>
    %45 = vector.broadcast %33 : vector<1x384xf32> to vector<8x384xf32>
    %46 = arith.addf %44, %45 : vector<8x384xf32>
    %47 = vector.extract_strided_slice %46 {offsets = [0, 0], sizes = [8, 128], strides = [1, 1]} : vector<8x384xf32> to vector<8x128xf32>
    %48 = vector.extract_strided_slice %46 {offsets = [0, 128], sizes = [8, 128], strides = [1, 1]} : vector<8x384xf32> to vector<8x128xf32>
    %49 = vector.extract_strided_slice %46 {offsets = [0, 256], sizes = [8, 128], strides = [1, 1]} : vector<8x384xf32> to vector<8x128xf32>
    %50 = arith.mulf %49, %48 : vector<8x128xf32>
    %51 = arith.truncf %50 : vector<8x128xf32> to vector<8x128xbf16>
    %c0_12 = arith.constant 0 : index
    %c0_13 = arith.constant 0 : index
    %c0_14 = arith.constant 0 : index
    %52 = vector.load %arg6[%c0_12, %c0_13, %c0_14] : memref<1x8x128xbf16, #tpu.memory_space<vmem>>, vector<1x8x128xbf16>
    %53 = vector.shape_cast %52 : vector<1x8x128xbf16> to vector<8x128xbf16>
    %54 = vector.shape_cast %51 : vector<8x128xbf16> to vector<1x8x128xbf16>
    tpu.vector_store %arg6[%c0_12, %c0_13, %c0_14], %54 {strides = array<i32>} : memref<1x8x128xbf16, #tpu.memory_space<vmem>>, vector<1x8x128xbf16>,
    %55 = arith.truncf %47 : vector<8x128xf32> to vector<8x128xbf16>
    %c0_15 = arith.constant 0 : index
    %c0_16 = arith.constant 0 : index
    %c0_17 = arith.constant 0 : index
    %56 = vector.load %arg7[%c0_15, %c0_16, %c0_17] : memref<1x8x128xbf16, #tpu.memory_space<vmem>>, vector<1x8x128xbf16>
    %57 = vector.shape_cast %56 : vector<1x8x128xbf16> to vector<8x128xbf16>
    %58 = vector.shape_cast %55 : vector<8x128xbf16> to vector<1x8x128xbf16>
    tpu.vector_store %arg7[%c0_15, %c0_16, %c0_17], %58 {strides = array<i32>} : memref<1x8x128xbf16, #tpu.memory_space<vmem>>, vector<1x8x128xbf16>,
    return
  }
  func.func @transform_0(%arg0: i32, %arg1: i32) -> (i32, i32, i32) {
    %c0_i32 = arith.constant 0 : i32
    %c0_i32_0 = arith.constant 0 : i32
    return %arg0, %arg1, %c0_i32 : i32, i32, i32
  }
  func.func @transform_1(%arg0: i32, %arg1: i32) -> (i32, i32, i32) {
    %c1_i32 = arith.constant 1 : i32
    %0 = arith.muli %arg1, %c1_i32 : i32
    %c1_i32_0 = arith.constant 1 : i32
    %1 = arith.subi %0, %c1_i32_0 : i32
    %c0_i32 = arith.constant 0 : i32
    %2 = arith.maxsi %1, %c0_i32 : i32
    %c0_i32_1 = arith.constant 0 : i32
    %c0_i32_2 = arith.constant 0 : i32
    return %arg0, %2, %c0_i32_1 : i32, i32, i32
  }
  func.func @transform_2(%arg0: i32, %arg1: i32) -> (i32, i32) {
    %c0_i32 = arith.constant 0 : i32
    %c0_i32_0 = arith.constant 0 : i32
    %c0_i32_1 = arith.constant 0 : i32
    return %c0_i32, %c0_i32_0 : i32, i32
  }
  func.func @transform_3(%arg0: i32, %arg1: i32) -> (i32, i32) {
    %c0_i32 = arith.constant 0 : i32
    %c0_i32_0 = arith.constant 0 : i32
    %c0_i32_1 = arith.constant 0 : i32
    return %c0_i32, %c0_i32_0 : i32, i32
  }
  func.func @transform_4(%arg0: i32, %arg1: i32) -> (i32, i32, i32) {
    %c0_i32 = arith.constant 0 : i32
    %c0_i32_0 = arith.constant 0 : i32
    return %arg0, %arg1, %c0_i32 : i32, i32, i32
  }
  func.func @transform_5(%arg0: i32, %arg1: i32) -> (i32, i32, i32) {
    %c0_i32 = arith.constant 0 : i32
    %c0_i32_0 = arith.constant 0 : i32
    return %arg0, %arg1, %c0_i32 : i32, i32, i32
  }
}

module attributes {stable_mosaic.version = 11 : i64} {
  func.func @_ln_matmul_kernel(%arg0: i32, %arg1: i32, %arg2: memref<16x128xf32, #tpu.memory_space<vmem>>, %arg3: memref<1x128xf32, #tpu.memory_space<vmem>>, %arg4: memref<1x128xf32, #tpu.memory_space<vmem>>, %arg5: memref<128x128xbf16, #tpu.memory_space<vmem>>, %arg6: memref<1x128xf32, #tpu.memory_space<vmem>>, %arg7: memref<16x128xbf16, #tpu.memory_space<vmem>>) attributes {dimension_semantics = [#tpu.dimension_semantics<parallel>, #tpu.dimension_semantics<parallel>], iteration_bounds = array<i64: 1, 1>, scalar_prefetch = 0 : i64, scratch_operands = 0 : i64, tpu.core_type = #tpu.core_type<tc>, window_params = [{transform_indices = @transform_0, window_bounds = array<i64: 16, 128>}, {pipeline_mode = #tpu.pipeline_mode<synchronous>, transform_indices = @transform_1, window_bounds = array<i64: 1, 128>}, {pipeline_mode = #tpu.pipeline_mode<synchronous>, transform_indices = @transform_2, window_bounds = array<i64: 1, 128>}, {transform_indices = @transform_3, window_bounds = array<i64: 128, 128>}, {transform_indices = @transform_4, window_bounds = array<i64: 1, 128>}, {transform_indices = @transform_5, window_bounds = array<i64: 16, 128>}]} {
    %c0 = arith.constant 0 : index
    %c0_0 = arith.constant 0 : index
    %0 = vector.load %arg2[%c0, %c0_0] : memref<16x128xf32, #tpu.memory_space<vmem>>, vector<16x128xf32>
    %cst = arith.constant dense<0.000000e+00> : vector<16xf32>
    %1 = vector.multi_reduction <add>, %0, %cst [1] : vector<16x128xf32> to vector<16xf32>
    %2 = vector.shape_cast %1 : vector<16xf32> to vector<16x1xf32>
    %cst_1 = arith.constant 3.125000e-02 : f32
    %3 = vector.broadcast %cst_1 : f32 to vector<16x1xf32>
    %4 = arith.mulf %2, %3 : vector<16x1xf32>
    %5 = arith.mulf %0, %0 : vector<16x128xf32>
    %cst_2 = arith.constant dense<0.000000e+00> : vector<16xf32>
    %6 = vector.multi_reduction <add>, %5, %cst_2 [1] : vector<16x128xf32> to vector<16xf32>
    %7 = vector.shape_cast %6 : vector<16xf32> to vector<16x1xf32>
    %cst_3 = arith.constant 3.125000e-02 : f32
    %8 = vector.broadcast %cst_3 : f32 to vector<16x1xf32>
    %9 = arith.mulf %7, %8 : vector<16x1xf32>
    %10 = arith.mulf %4, %4 : vector<16x1xf32>
    %11 = arith.subf %9, %10 : vector<16x1xf32>
    %cst_4 = arith.constant 9.99999974E-6 : f32
    %12 = vector.broadcast %cst_4 : f32 to vector<16x1xf32>
    %13 = arith.addf %11, %12 : vector<16x1xf32>
    %14 = math.rsqrt %13 : vector<16x1xf32>
    %15 = vector.broadcast %4 : vector<16x1xf32> to vector<16x128xf32>
    %16 = arith.subf %0, %15 : vector<16x128xf32>
    %17 = vector.broadcast %14 : vector<16x1xf32> to vector<16x128xf32>
    %18 = arith.mulf %16, %17 : vector<16x128xf32>
    %c0_5 = arith.constant 0 : index
    %c0_6 = arith.constant 0 : index
    %19 = vector.load %arg3[%c0_5, %c0_6] : memref<1x128xf32, #tpu.memory_space<vmem>>, vector<1x128xf32>
    %20 = vector.broadcast %19 : vector<1x128xf32> to vector<16x128xf32>
    %21 = arith.mulf %18, %20 : vector<16x128xf32>
    %c0_7 = arith.constant 0 : index
    %c0_8 = arith.constant 0 : index
    %22 = vector.load %arg4[%c0_7, %c0_8] : memref<1x128xf32, #tpu.memory_space<vmem>>, vector<1x128xf32>
    %23 = vector.broadcast %22 : vector<1x128xf32> to vector<16x128xf32>
    %24 = arith.addf %21, %23 : vector<16x128xf32>
    %25 = arith.truncf %24 : vector<16x128xf32> to vector<16x128xbf16>
    %c0_9 = arith.constant 0 : index
    %c0_10 = arith.constant 0 : index
    %26 = vector.load %arg5[%c0_9, %c0_10] : memref<128x128xbf16, #tpu.memory_space<vmem>>, vector<128x128xbf16>
    %cst_11 = arith.constant dense<0.000000e+00> : vector<16x128xf32>
    %27 = tpu.matmul %25, %26, %cst_11 {dimension_numbers = #tpu.dot_dimension_numbers<[1], [0], [0], [1], [0, 0, 1, 1], [], []>} : vector<16x128xbf16>, vector<128x128xbf16>, vector<16x128xf32> -> vector<16x128xf32>
    %c0_12 = arith.constant 0 : index
    %c0_13 = arith.constant 0 : index
    %28 = vector.load %arg6[%c0_12, %c0_13] : memref<1x128xf32, #tpu.memory_space<vmem>>, vector<1x128xf32>
    %29 = vector.broadcast %28 : vector<1x128xf32> to vector<16x128xf32>
    %30 = arith.addf %27, %29 : vector<16x128xf32>
    %31 = arith.mulf %30, %30 : vector<16x128xf32>
    %32 = arith.mulf %30, %31 : vector<16x128xf32>
    %cst_14 = arith.constant 4.471500e-02 : f32
    %33 = vector.broadcast %cst_14 : f32 to vector<16x128xf32>
    %34 = arith.mulf %33, %32 : vector<16x128xf32>
    %35 = arith.addf %30, %34 : vector<16x128xf32>
    %cst_15 = arith.constant 0.797884583 : f32
    %36 = vector.broadcast %cst_15 : f32 to vector<16x128xf32>
    %37 = arith.mulf %36, %35 : vector<16x128xf32>
    %38 = math.tanh %37 : vector<16x128xf32>
    %cst_16 = arith.constant 1.000000e+00 : f32
    %39 = vector.broadcast %cst_16 : f32 to vector<16x128xf32>
    %40 = arith.addf %39, %38 : vector<16x128xf32>
    %cst_17 = arith.constant 5.000000e-01 : f32
    %41 = vector.broadcast %cst_17 : f32 to vector<16x128xf32>
    %42 = arith.mulf %41, %40 : vector<16x128xf32>
    %43 = arith.mulf %30, %42 : vector<16x128xf32>
    %44 = arith.truncf %43 : vector<16x128xf32> to vector<16x128xbf16>
    %c0_18 = arith.constant 0 : index
    %c0_19 = arith.constant 0 : index
    %45 = vector.load %arg7[%c0_18, %c0_19] : memref<16x128xbf16, #tpu.memory_space<vmem>>, vector<16x128xbf16>
    tpu.vector_store %arg7[%c0_18, %c0_19], %44 {strides = array<i32>} : memref<16x128xbf16, #tpu.memory_space<vmem>>, vector<16x128xbf16>,
    return
  }
  func.func @transform_0(%arg0: i32, %arg1: i32) -> (i32, i32) {
    %c0_i32 = arith.constant 0 : i32
    %c0_i32_0 = arith.constant 0 : i32
    return %arg0, %c0_i32 : i32, i32
  }
  func.func @transform_1(%arg0: i32, %arg1: i32) -> (i32, i32) {
    %c0_i32 = arith.constant 0 : i32
    %c0_i32_0 = arith.constant 0 : i32
    %c0_i32_1 = arith.constant 0 : i32
    return %c0_i32, %c0_i32_0 : i32, i32
  }
  func.func @transform_2(%arg0: i32, %arg1: i32) -> (i32, i32) {
    %c0_i32 = arith.constant 0 : i32
    %c0_i32_0 = arith.constant 0 : i32
    %c0_i32_1 = arith.constant 0 : i32
    return %c0_i32, %c0_i32_0 : i32, i32
  }
  func.func @transform_3(%arg0: i32, %arg1: i32) -> (i32, i32) {
    %c0_i32 = arith.constant 0 : i32
    %c0_i32_0 = arith.constant 0 : i32
    return %c0_i32, %arg1 : i32, i32
  }
  func.func @transform_4(%arg0: i32, %arg1: i32) -> (i32, i32) {
    %c0_i32 = arith.constant 0 : i32
    %c0_i32_0 = arith.constant 0 : i32
    return %c0_i32, %arg1 : i32, i32
  }
  func.func @transform_5(%arg0: i32, %arg1: i32) -> (i32, i32) {
    %c0_i32 = arith.constant 0 : i32
    return %arg0, %arg1 : i32, i32
  }
}

module attributes {stable_mosaic.version = 11 : i64} {
  func.func @_gate_matmul_kernel(%arg0: i32, %arg1: i32, %arg2: memref<16x128xf32, #tpu.memory_space<vmem>>, %arg3: memref<16x128xbf16, #tpu.memory_space<vmem>>, %arg4: memref<16x128xbf16, #tpu.memory_space<vmem>>, %arg5: memref<1x128xf32, #tpu.memory_space<vmem>>, %arg6: memref<128x128xbf16, #tpu.memory_space<vmem>>, %arg7: memref<1x128xf32, #tpu.memory_space<vmem>>, %arg8: memref<16x128xf32, #tpu.memory_space<vmem>>, %arg9: memref<16x128xf32, #tpu.memory_space<vmem>>) attributes {dimension_semantics = [#tpu.dimension_semantics<parallel>, #tpu.dimension_semantics<parallel>], iteration_bounds = array<i64: 1, 1>, scalar_prefetch = 0 : i64, scratch_operands = 0 : i64, tpu.core_type = #tpu.core_type<tc>, window_params = [{transform_indices = @transform_0, window_bounds = array<i64: 16, 128>}, {transform_indices = @transform_1, window_bounds = array<i64: 16, 128>}, {transform_indices = @transform_2, window_bounds = array<i64: 16, 128>}, {pipeline_mode = #tpu.pipeline_mode<synchronous>, transform_indices = @transform_3, window_bounds = array<i64: 1, 128>}, {transform_indices = @transform_4, window_bounds = array<i64: 128, 128>}, {transform_indices = @transform_5, window_bounds = array<i64: 1, 128>}, {transform_indices = @transform_6, window_bounds = array<i64: 16, 128>}, {transform_indices = @transform_7, window_bounds = array<i64: 16, 128>}]} {
    %c0 = arith.constant 0 : index
    %c0_0 = arith.constant 0 : index
    %0 = vector.load %arg3[%c0, %c0_0] : memref<16x128xbf16, #tpu.memory_space<vmem>>, vector<16x128xbf16>
    %1 = arith.extf %0 : vector<16x128xbf16> to vector<16x128xf32>
    %c0_1 = arith.constant 0 : index
    %c0_2 = arith.constant 0 : index
    %2 = vector.load %arg2[%c0_1, %c0_2] : memref<16x128xf32, #tpu.memory_space<vmem>>, vector<16x128xf32>
    %c0_3 = arith.constant 0 : index
    %c0_4 = arith.constant 0 : index
    %3 = vector.load %arg5[%c0_3, %c0_4] : memref<1x128xf32, #tpu.memory_space<vmem>>, vector<1x128xf32>
    %4 = vector.broadcast %3 : vector<1x128xf32> to vector<16x128xf32>
    %5 = arith.mulf %4, %1 : vector<16x128xf32>
    %6 = arith.addf %2, %5 : vector<16x128xf32>
    %c0_5 = arith.constant 0 : index
    %c0_6 = arith.constant 0 : index
    %7 = vector.load %arg4[%c0_5, %c0_6] : memref<16x128xbf16, #tpu.memory_space<vmem>>, vector<16x128xbf16>
    %8 = arith.extf %7 : vector<16x128xbf16> to vector<16x128xf32>
    %9 = arith.mulf %6, %8 : vector<16x128xf32>
    %10 = arith.truncf %9 : vector<16x128xf32> to vector<16x128xbf16>
    %c0_7 = arith.constant 0 : index
    %c0_8 = arith.constant 0 : index
    %11 = vector.load %arg6[%c0_7, %c0_8] : memref<128x128xbf16, #tpu.memory_space<vmem>>, vector<128x128xbf16>
    %cst = arith.constant dense<0.000000e+00> : vector<16x128xf32>
    %12 = tpu.matmul %10, %11, %cst {dimension_numbers = #tpu.dot_dimension_numbers<[1], [0], [0], [1], [0, 0, 1, 1], [], []>} : vector<16x128xbf16>, vector<128x128xbf16>, vector<16x128xf32> -> vector<16x128xf32>
    %c0_9 = arith.constant 0 : index
    %c0_10 = arith.constant 0 : index
    %13 = vector.load %arg7[%c0_9, %c0_10] : memref<1x128xf32, #tpu.memory_space<vmem>>, vector<1x128xf32>
    %14 = vector.broadcast %13 : vector<1x128xf32> to vector<16x128xf32>
    %15 = arith.addf %12, %14 : vector<16x128xf32>
    %c0_11 = arith.constant 0 : index
    %c0_12 = arith.constant 0 : index
    %16 = vector.load %arg8[%c0_11, %c0_12] : memref<16x128xf32, #tpu.memory_space<vmem>>, vector<16x128xf32>
    %17 = arith.addf %15, %16 : vector<16x128xf32>
    %c0_13 = arith.constant 0 : index
    %c0_14 = arith.constant 0 : index
    %18 = vector.load %arg9[%c0_13, %c0_14] : memref<16x128xf32, #tpu.memory_space<vmem>>, vector<16x128xf32>
    tpu.vector_store %arg9[%c0_13, %c0_14], %17 {strides = array<i32>} : memref<16x128xf32, #tpu.memory_space<vmem>>, vector<16x128xf32>,
    return
  }
  func.func @transform_0(%arg0: i32, %arg1: i32) -> (i32, i32) {
    %c0_i32 = arith.constant 0 : i32
    %c0_i32_0 = arith.constant 0 : i32
    return %arg0, %c0_i32 : i32, i32
  }
  func.func @transform_1(%arg0: i32, %arg1: i32) -> (i32, i32) {
    %c0_i32 = arith.constant 0 : i32
    %c0_i32_0 = arith.constant 0 : i32
    return %arg0, %c0_i32 : i32, i32
  }
  func.func @transform_2(%arg0: i32, %arg1: i32) -> (i32, i32) {
    %c0_i32 = arith.constant 0 : i32
    %c0_i32_0 = arith.constant 0 : i32
    return %arg0, %c0_i32 : i32, i32
  }
  func.func @transform_3(%arg0: i32, %arg1: i32) -> (i32, i32) {
    %c0_i32 = arith.constant 0 : i32
    %c0_i32_0 = arith.constant 0 : i32
    %c0_i32_1 = arith.constant 0 : i32
    return %c0_i32, %c0_i32_0 : i32, i32
  }
  func.func @transform_4(%arg0: i32, %arg1: i32) -> (i32, i32) {
    %c0_i32 = arith.constant 0 : i32
    %c0_i32_0 = arith.constant 0 : i32
    return %c0_i32, %arg1 : i32, i32
  }
  func.func @transform_5(%arg0: i32, %arg1: i32) -> (i32, i32) {
    %c0_i32 = arith.constant 0 : i32
    %c0_i32_0 = arith.constant 0 : i32
    return %c0_i32, %arg1 : i32, i32
  }
  func.func @transform_6(%arg0: i32, %arg1: i32) -> (i32, i32) {
    %c0_i32 = arith.constant 0 : i32
    return %arg0, %arg1 : i32, i32
  }
  func.func @transform_7(%arg0: i32, %arg1: i32) -> (i32, i32) {
    %c0_i32 = arith.constant 0 : i32
    return %arg0, %arg1 : i32, i32
  }
}

module attributes {stable_mosaic.version = 11 : i64} {
  func.func @_matmul_res_kernel(%arg0: i32, %arg1: i32, %arg2: i32, %arg3: memref<16x128xbf16, #tpu.memory_space<vmem>>, %arg4: memref<128x128xbf16, #tpu.memory_space<vmem>>, %arg5: memref<1x128xf32, #tpu.memory_space<vmem>>, %arg6: memref<16x128xf32, #tpu.memory_space<vmem>>, %arg7: memref<16x128xf32, #tpu.memory_space<vmem>>, %arg8: memref<16x128xf32, #tpu.memory_space<vmem>>) attributes {dimension_semantics = [#tpu.dimension_semantics<parallel>, #tpu.dimension_semantics<parallel>, #tpu.dimension_semantics<arbitrary>], iteration_bounds = array<i64: 1, 1, 1>, scalar_prefetch = 0 : i64, scratch_operands = 1 : i64, tpu.core_type = #tpu.core_type<tc>, window_params = [{transform_indices = @transform_0, window_bounds = array<i64: 16, 128>}, {transform_indices = @transform_1, window_bounds = array<i64: 128, 128>}, {transform_indices = @transform_2, window_bounds = array<i64: 1, 128>}, {transform_indices = @transform_3, window_bounds = array<i64: 16, 128>}, {transform_indices = @transform_4, window_bounds = array<i64: 16, 128>}]} {
    %c0_i32 = arith.constant 0 : i32
    %0 = arith.cmpi eq, %arg2, %c0_i32 : i32
    %1 = arith.extui %0 : i1 to i32
    %c0_i32_0 = arith.constant 0 : i32
    %2 = arith.cmpi ne, %1, %c0_i32_0 : i32
    scf.if %2 {
      %cst_10 = arith.constant 0.000000e+00 : f32
      %12 = vector.broadcast %cst_10 : f32 to vector<16x128xf32>
      %c0_11 = arith.constant 0 : index
      %c0_12 = arith.constant 0 : index
      %13 = vector.load %arg8[%c0_11, %c0_12] : memref<16x128xf32, #tpu.memory_space<vmem>>, vector<16x128xf32>
      tpu.vector_store %arg8[%c0_11, %c0_12], %12 {strides = array<i32>} : memref<16x128xf32, #tpu.memory_space<vmem>>, vector<16x128xf32>,
    } else {
    }
    %c0 = arith.constant 0 : index
    %c0_1 = arith.constant 0 : index
    %3 = vector.load %arg8[%c0, %c0_1] : memref<16x128xf32, #tpu.memory_space<vmem>>, vector<16x128xf32>
    %c0_2 = arith.constant 0 : index
    %c0_3 = arith.constant 0 : index
    %4 = vector.load %arg3[%c0_2, %c0_3] : memref<16x128xbf16, #tpu.memory_space<vmem>>, vector<16x128xbf16>
    %c0_4 = arith.constant 0 : index
    %c0_5 = arith.constant 0 : index
    %5 = vector.load %arg4[%c0_4, %c0_5] : memref<128x128xbf16, #tpu.memory_space<vmem>>, vector<128x128xbf16>
    %cst = arith.constant dense<0.000000e+00> : vector<16x128xf32>
    %6 = tpu.matmul %4, %5, %cst {dimension_numbers = #tpu.dot_dimension_numbers<[1], [0], [0], [1], [0, 0, 1, 1], [], []>} : vector<16x128xbf16>, vector<128x128xbf16>, vector<16x128xf32> -> vector<16x128xf32>
    %7 = arith.addf %3, %6 : vector<16x128xf32>
    %c0_6 = arith.constant 0 : index
    %c0_7 = arith.constant 0 : index
    %8 = vector.load %arg8[%c0_6, %c0_7] : memref<16x128xf32, #tpu.memory_space<vmem>>, vector<16x128xf32>
    tpu.vector_store %arg8[%c0_6, %c0_7], %7 {strides = array<i32>} : memref<16x128xf32, #tpu.memory_space<vmem>>, vector<16x128xf32>,
    %c0_i32_8 = arith.constant 0 : i32
    %9 = arith.cmpi eq, %arg2, %c0_i32_8 : i32
    %10 = arith.extui %9 : i1 to i32
    %c0_i32_9 = arith.constant 0 : i32
    %11 = arith.cmpi ne, %10, %c0_i32_9 : i32
    scf.if %11 {
      %c0_10 = arith.constant 0 : index
      %c0_11 = arith.constant 0 : index
      %12 = vector.load %arg8[%c0_10, %c0_11] : memref<16x128xf32, #tpu.memory_space<vmem>>, vector<16x128xf32>
      %c0_12 = arith.constant 0 : index
      %c0_13 = arith.constant 0 : index
      %13 = vector.load %arg5[%c0_12, %c0_13] : memref<1x128xf32, #tpu.memory_space<vmem>>, vector<1x128xf32>
      %14 = vector.broadcast %13 : vector<1x128xf32> to vector<16x128xf32>
      %15 = arith.addf %12, %14 : vector<16x128xf32>
      %c0_14 = arith.constant 0 : index
      %c0_15 = arith.constant 0 : index
      %16 = vector.load %arg6[%c0_14, %c0_15] : memref<16x128xf32, #tpu.memory_space<vmem>>, vector<16x128xf32>
      %17 = arith.addf %15, %16 : vector<16x128xf32>
      %c0_16 = arith.constant 0 : index
      %c0_17 = arith.constant 0 : index
      %18 = vector.load %arg7[%c0_16, %c0_17] : memref<16x128xf32, #tpu.memory_space<vmem>>, vector<16x128xf32>
      tpu.vector_store %arg7[%c0_16, %c0_17], %17 {strides = array<i32>} : memref<16x128xf32, #tpu.memory_space<vmem>>, vector<16x128xf32>,
    } else {
    }
    return
  }
  func.func @transform_0(%arg0: i32, %arg1: i32, %arg2: i32) -> (i32, i32) {
    %c0_i32 = arith.constant 0 : i32
    return %arg0, %arg2 : i32, i32
  }
  func.func @transform_1(%arg0: i32, %arg1: i32, %arg2: i32) -> (i32, i32) {
    %c0_i32 = arith.constant 0 : i32
    return %arg2, %arg1 : i32, i32
  }
  func.func @transform_2(%arg0: i32, %arg1: i32, %arg2: i32) -> (i32, i32) {
    %c0_i32 = arith.constant 0 : i32
    %c0_i32_0 = arith.constant 0 : i32
    return %c0_i32, %arg1 : i32, i32
  }
  func.func @transform_3(%arg0: i32, %arg1: i32, %arg2: i32) -> (i32, i32) {
    %c0_i32 = arith.constant 0 : i32
    return %arg0, %arg1 : i32, i32
  }
  func.func @transform_4(%arg0: i32, %arg1: i32, %arg2: i32) -> (i32, i32) {
    %c0_i32 = arith.constant 0 : i32
    return %arg0, %arg1 : i32, i32
  }
}

module attributes {stable_mosaic.version = 11 : i64} {
  func.func @_layernorm_kernel(%arg0: i32, %arg1: memref<2x128xf32, #tpu.memory_space<vmem>>, %arg2: memref<1x128xf32, #tpu.memory_space<vmem>>, %arg3: memref<1x128xf32, #tpu.memory_space<vmem>>, %arg4: memref<2x128xf32, #tpu.memory_space<vmem>>) attributes {dimension_semantics = [#tpu.dimension_semantics<parallel>], iteration_bounds = array<i64: 1>, scalar_prefetch = 0 : i64, scratch_operands = 0 : i64, tpu.core_type = #tpu.core_type<tc>, window_params = [{transform_indices = @transform_0, window_bounds = array<i64: 2, 128>}, {pipeline_mode = #tpu.pipeline_mode<synchronous>, transform_indices = @transform_1, window_bounds = array<i64: 1, 128>}, {pipeline_mode = #tpu.pipeline_mode<synchronous>, transform_indices = @transform_2, window_bounds = array<i64: 1, 128>}, {transform_indices = @transform_3, window_bounds = array<i64: 2, 128>}]} {
    %c0 = arith.constant 0 : index
    %c0_0 = arith.constant 0 : index
    %0 = vector.load %arg1[%c0, %c0_0] : memref<2x128xf32, #tpu.memory_space<vmem>>, vector<2x128xf32>
    %cst = arith.constant dense<0.000000e+00> : vector<2xf32>
    %1 = vector.multi_reduction <add>, %0, %cst [1] : vector<2x128xf32> to vector<2xf32>
    %2 = vector.shape_cast %1 : vector<2xf32> to vector<2x1xf32>
    %cst_1 = arith.constant 3.125000e-02 : f32
    %3 = vector.broadcast %cst_1 : f32 to vector<2x1xf32>
    %4 = arith.mulf %2, %3 : vector<2x1xf32>
    %5 = arith.mulf %0, %0 : vector<2x128xf32>
    %cst_2 = arith.constant dense<0.000000e+00> : vector<2xf32>
    %6 = vector.multi_reduction <add>, %5, %cst_2 [1] : vector<2x128xf32> to vector<2xf32>
    %7 = vector.shape_cast %6 : vector<2xf32> to vector<2x1xf32>
    %cst_3 = arith.constant 3.125000e-02 : f32
    %8 = vector.broadcast %cst_3 : f32 to vector<2x1xf32>
    %9 = arith.mulf %7, %8 : vector<2x1xf32>
    %10 = arith.mulf %4, %4 : vector<2x1xf32>
    %11 = arith.subf %9, %10 : vector<2x1xf32>
    %cst_4 = arith.constant 9.99999974E-6 : f32
    %12 = vector.broadcast %cst_4 : f32 to vector<2x1xf32>
    %13 = arith.addf %11, %12 : vector<2x1xf32>
    %14 = math.rsqrt %13 : vector<2x1xf32>
    %15 = vector.broadcast %4 : vector<2x1xf32> to vector<2x128xf32>
    %16 = arith.subf %0, %15 : vector<2x128xf32>
    %17 = vector.broadcast %14 : vector<2x1xf32> to vector<2x128xf32>
    %18 = arith.mulf %16, %17 : vector<2x128xf32>
    %c0_5 = arith.constant 0 : index
    %c0_6 = arith.constant 0 : index
    %19 = vector.load %arg2[%c0_5, %c0_6] : memref<1x128xf32, #tpu.memory_space<vmem>>, vector<1x128xf32>
    %20 = vector.broadcast %19 : vector<1x128xf32> to vector<2x128xf32>
    %21 = arith.mulf %18, %20 : vector<2x128xf32>
    %c0_7 = arith.constant 0 : index
    %c0_8 = arith.constant 0 : index
    %22 = vector.load %arg3[%c0_7, %c0_8] : memref<1x128xf32, #tpu.memory_space<vmem>>, vector<1x128xf32>
    %23 = vector.broadcast %22 : vector<1x128xf32> to vector<2x128xf32>
    %24 = arith.addf %21, %23 : vector<2x128xf32>
    %c0_9 = arith.constant 0 : index
    %c0_10 = arith.constant 0 : index
    %25 = vector.load %arg4[%c0_9, %c0_10] : memref<2x128xf32, #tpu.memory_space<vmem>>, vector<2x128xf32>
    tpu.vector_store %arg4[%c0_9, %c0_10], %24 {strides = array<i32>} : memref<2x128xf32, #tpu.memory_space<vmem>>, vector<2x128xf32>,
    return
  }
  func.func @transform_0(%arg0: i32) -> (i32, i32) {
    %c0_i32 = arith.constant 0 : i32
    %c0_i32_0 = arith.constant 0 : i32
    return %arg0, %c0_i32 : i32, i32
  }
  func.func @transform_1(%arg0: i32) -> (i32, i32) {
    %c0_i32 = arith.constant 0 : i32
    %c0_i32_0 = arith.constant 0 : i32
    %c0_i32_1 = arith.constant 0 : i32
    return %c0_i32, %c0_i32_0 : i32, i32
  }
  func.func @transform_2(%arg0: i32) -> (i32, i32) {
    %c0_i32 = arith.constant 0 : i32
    %c0_i32_0 = arith.constant 0 : i32
    %c0_i32_1 = arith.constant 0 : i32
    return %c0_i32, %c0_i32_0 : i32, i32
  }
  func.func @transform_3(%arg0: i32) -> (i32, i32) {
    %c0_i32 = arith.constant 0 : i32
    %c0_i32_0 = arith.constant 0 : i32
    return %arg0, %c0_i32 : i32, i32
  }
}

</mosaic_0001>

<bundles_post_ra>
// kernel: reverse.5
= control target key start
LH: loop header
LB: loop body
LE: loop exit
PB: predicated region body
PF: predicated region fallthrough
CT: control target
= control target key end

     0   :  { %v40_v2 = vld [vmem:[#allocation0 + $0x7] ss:$-1 sm:$0xff]  ;;  %v47_v3 = vlaneseq  ;;  %v54_v5 = vld [vmem:[#allocation0 + $0x17] ss:$-1 sm:$0xff]  ;;  %s135_s0 = inlined_call_operand.vmem [shape: f32[2,32,7], index: 0, kind: input, shape index: {}]   ;;  %s136_s1 = inlined_call_operand.vmem [shape: f32[2,32,7], index: 1, kind: output, shape index: {}]  }
   0x1   :  { %v32_v0 = vld [vmem:[%s135_s0] sm:$0xff]  ;;  %v34_v1 = vld [vmem:[%s135_s0 + $0x8] sm:$0xff]  ;;  %v41_v4 = vrot.slane %v40_v2, 1  ;;  %v55_v6 = vrot.slane %v54_v5, 1 }
   0x2   :  { %33 = vst [vmem:[#allocation0 + $0x8] sm:$0xff] %v32_v0  ;;  %35 = vst [vmem:[#allocation0 + $0x18] sm:$0xff] %v34_v1  ;;  %v48_v7 = vshrl.u32 %v47_v3, 7 }
   0x3   :  { %42 = vst [vmem:[#allocation1] sm:$0xff] %v41_v4  ;;  %56 = vst [vmem:[#allocation1 + $0x8] sm:$0xff] %v55_v6 }
   0x4   :  { %vm49_vm0 = vcmp.lt.s32.totalorder %v48_v7, 7 }
   0x9   :  { %v45_v8 = vld [vmem:[#allocation0 + $0xf] ss:$-1 sm:$0xff]  ;;  %v59_v9 = vld [vmem:[#allocation0 + $0x1f] ss:$-1 sm:$0xff] }
   0xa   :  { %v46_v10 = vrot.slane %v45_v8, 1  ;;  %v60_v11 = vrot.slane %v59_v9, 1 }
   0xc   :  { %50 = vst.msk [vmem:[#allocation1] sm:$0xff] %vm49_vm0, %v46_v10  ;;  %64 = vst.msk [vmem:[#allocation1 + $0x8] sm:$0xff] %vm49_vm0, %v60_v11 }
  0x13   :  { %v94_v12 = vld [vmem:[#allocation1] sm:$0xff]  ;;  %v96_v13 = vld [vmem:[#allocation1 + $0x8] sm:$0xff] }
  0x14   :  { %95 = vst [vmem:[%s136_s1] sm:$0xff] %v94_v12  ;;  %97 = vst [vmem:[%s136_s1 + $0x8] sm:$0xff] %v96_v13 }

// kernel: encoder_forward.12
= control target key start
LH: loop header
LB: loop body
LE: loop exit
PB: predicated region body
PF: predicated region fallthrough
CT: control target
= control target key end

     0   :  { %s749_s18 = smov 0   ;;  %s751_s19 = smov 0   ;;  %s874_s0 = inlined_call_operand.vmem [shape: bf16[2,8,384], index: 0, kind: input, shape index: {}, may-alias: {0,1}]   ;;  %s875_s1 = inlined_call_operand.vmem [shape: bf16[2,8,384], index: 1, kind: input, shape index: {}, may-alias: {0,1}]   ;;  %s876_s2 = inlined_call_operand.vmem [shape: f32[3,384], index: 2, kind: input, shape index: {}]   ;;  %s877_s3 = inlined_call_operand.vmem [shape: f32[1,384], index: 3, kind: input, shape index: {}]   ;;  %s878_s4 = inlined_call_operand.vmem [shape: bf16[2,8,128], index: 4, kind: output, shape index: {0}]   ;;  %s879_s5 = inlined_call_operand.vmem [shape: bf16[2,8,128], index: 5, kind: output, shape index: {1}]  }
   0x1   :  { %s753_s20 = smov 0  }
   0x2 LB: > { %s28_s21 = sadd.s32 1, %s713_s19  ;;  %p663_p0 = scmp.ge.s32.totalorder %s717_s20, 1  ;;  %s717_s20 = sphi %s753_s20, %s16_s20   ;;  %s713_s19 = sphi %s751_s19, %s881_s19   ;;  %s709_s18 = sphi %s749_s18, %s880_s18  }
   0x3   : > { %p30_p1 = scmp.ge.s32.totalorder %s28_s21, 2  ;;  %p240_p2 = scmp.lt.s32.totalorder %s717_s20, 3 }
   0x5   : > { %s883_s21 = smov (%p30_p1, %s28_s21), 0  ;;  %p241_p3 = pnand %p663_p0, %p240_p2 }
   0x6   : > { %p293_p4 = scmp.lt.s32.totalorder (!%p241_p3), %s709_s18, 1  ;;  %v348_v0 = vlaneseq (!%p241_p3)  ;;  %v774_v2 = vld [vmem:[%s876_s2] sm:$0x77] (!%p241_p3)  ;;  %v393_v3 = vld [vmem:[%s876_s2 + $0x8] sm:$0x7] (!%p241_p3) }
   0x7   : > { %244 = sbr.rel (%p241_p3) target bundleno = 42 (0x2a), region = 36  ;;  %v788_v6 = vld [vmem:[%s877_s3] sm:$0x7] (!%p241_p3) }
   0x8   : > { %v769_v1 = vshrl.u32 (!%p241_p3), %v348_v0, 7 }
   0xa   : > { %vm350_vm0 = vcmp.ge.s32.totalorder (!%p241_p3), %v769_v1, 1  ;;  %v356_v4 = vsub.s32 (!%p241_p3), 7, %v769_v1  ;;  %v783_v5 = vsub.s32 (!%p241_p3), 6, %v769_v1  ;;  %vm369_vm1 = vcmp.eq.s32.totalorder (!%p241_p3), %v769_v1, 0 }
   0xb   : > { %v792_v7 = vsub.s32 (!%p241_p3), 0, %v769_v1  ;;  %v403_v8 = vsub.s32 (!%p241_p3), 4, %v769_v1  ;;  %v796_v9 = vsub.s32 (!%p241_p3), 1, %v769_v1  ;;  %vm385_vm2 = vcmp.ge.s32.totalorder (!%p241_p3), %v769_v1, 2 }
   0xc   : > { %v433_v10 = vsub.s32 (!%p241_p3), 5, %v769_v1  ;;  %v807_v11 = vsub.s32 (!%p241_p3), 2, %v769_v1  ;;  %v467_v12 = vrot.slane (!%p241_p3), %v774_v2, %v783_v5 }
   0xd   : > { %v404_v16 = vrot.slane (!%p241_p3), %v774_v2, %v403_v8  ;;  %v408_v17 = vrot.slane (!%p241_p3), %v393_v3, %v792_v7  ;;  %v438_v18 = vrot.slane (!%p241_p3), %v393_v3, %v796_v9  ;;  %v501_v19 = vrot.slane (!%p241_p3), %v788_v6, %v796_v9 }
   0xe   : > { %s885_s18 = smov (!%p293_p4, %s709_s18), 1  ;;  %v434_v36 = vrot.slane %v774_v2, %v433_v10  ;;  %v471_v40 = vrot.slane %v393_v3, %v807_v11  ;;  %v482_v46 = vrot.slane %v467_v12, %v807_v11  ;;  %v505_v48 = vrot.slane %v788_v6, %v807_v11 }
   0xf   : > { %s670_s26 = smul.u32 12, %s885_s18  ;;  %v419_v27 = vrot.slane %v404_v16, %v792_v7  ;;  %v423_v28 = vrot.slane %v408_v17, %v792_v7  ;;  %v453_v39 = vrot.slane %v438_v18, %v796_v9  ;;  %v400_v0 = vrot.slane %v774_v2, %v792_v7  ;;  %s666_s10 = sshll.u32 %s885_s18, 2 }
  0x10   : > { %v449_v45 = vrot.slane %v434_v36, %v796_v9  ;;  %v486_v47 = vrot.slane %v471_v40, %v807_v11  ;;  %v463_v8 = vrot.slane %v774_v2, %v807_v11  ;;  %v497_v1 = vrot.slane %v788_v6, %v792_v7  ;;  %s323_s13 = scalar_lea.vmem %s878_s4, %s666_s10  ;;  %s330_s16 = scalar_lea.vmem %s879_s5, %s666_s10 }
  0x11   : > { %s301_s6 = scalar_lea.vmem %s874_s0, %s670_s26  ;;  %s313_s9 = scalar_lea.vmem %s875_s1, %s670_s26 }
  0x12   : > { %v331_v13 = vld [vmem:[%s301_s6] sm:$0xff]  ;;  %v332_v14 = vld [vmem:[%s301_s6 + $0x8] sm:$0xf]  ;;  %v478_v17 = vrot.slane %v463_v8, %v807_v11 }
  0x13   : > { %v336_v15 = vld [vmem:[%s313_s9] sm:$0xff]  ;;  %v333_v20 = vunpack.c.l.bf16 %v331_v13  ;;  %v334_v21 = vunpack.c.h.bf16 %v331_v13  ;;  %v335_v22 = vunpack.c.l.bf16 %v332_v14  ;;  %v337_v23 = vld [vmem:[%s313_s9 + $0x8] sm:$0xf]  ;;  %v415_v13 = vrot.slane %v400_v0, %v792_v7 }
  0x14   : > { %v338_v24 = vunpack.c.l.bf16 %v336_v15  ;;  %v339_v25 = vunpack.c.h.bf16 %v336_v15  ;;  %v340_v26 = vunpack.c.l.bf16 %v337_v23 }
  0x15   : > { %v352_v30 = vrot.slane %v334_v21, 7  ;;  %v353_v31 = vrot.slane %v335_v22, 7  ;;  %v387_v32 = vrot.slane %v334_v21, 6  ;;  %v388_v35 = vrot.slane %v335_v22, 6 }
  0x16   : > { %v345_v29 = vmul.f32 0.0, %v338_v24  ;;  %v346_v33 = vmul.f32 0.0, %v339_v25  ;;  %v347_v34 = vmul.f32 0.0, %v340_v26  ;;  %v488_v59 = vmul.f32 %v482_v46, %v334_v21 }
  0x17   : > { %v489_v60 = vmul.f32 %v486_v47, %v335_v22  ;;  %v351_v61 = vrot.slane %v333_v20, 7  ;;  %v386_v63 = vrot.slane %v333_v20, 6 }
  0x18   : > { %v357_v37 = vrot.slane %v345_v29, %v356_v4  ;;  %v373_v38 = vrot.slane %v345_v29, %v783_v5  ;;  %v361_v41 = vrot.slane %v346_v33, %v356_v4  ;;  %v365_v42 = vrot.slane %v347_v34, %v356_v4 }
  0x19   : > { %v377_v43 = vrot.slane %v346_v33, %v783_v5  ;;  %v381_v44 = vrot.slane %v347_v34, %v783_v5  ;;  %v430_v5 = vrot.slane %v774_v2, %v796_v9  ;;  %v487_v2 = vmul.f32 %v478_v17, %v333_v20 }
  0x1a   : > { %v367_v49 = vsel %vm350_vm0, %v352_v30, %v361_v41  ;;  %v368_v50 = vsel %vm350_vm0, %v353_v31, %v365_v42  ;;  %v382_v62 = vsel %vm369_vm1, %v373_v38, %v357_v37  ;;  %v366_v10 = vsel %vm350_vm0, %v351_v61, %v357_v37 }
  0x1b   : > { %v383_v51 = vsel %vm369_vm1, %v377_v43, %v361_v41  ;;  %v384_v52 = vsel %vm369_vm1, %v381_v44, %v365_v42  ;;  %v455_v55 = vmul.f32 %v449_v45, %v367_v49  ;;  %v456_v56 = vmul.f32 %v453_v39, %v368_v50 }
  0x1c   : > { %v390_v53 = vsel %vm385_vm2, %v387_v32, %v383_v51  ;;  %v391_v54 = vsel %vm385_vm2, %v388_v35, %v384_v52  ;;  %v389_v12 = vsel %vm385_vm2, %v386_v63, %v382_v62  ;;  %v445_v16 = vrot.slane %v430_v5, %v796_v9 }
  0x1d   : > { %v425_v57 = vmul.f32 %v419_v27, %v390_v53  ;;  %v426_v58 = vmul.f32 %v423_v28, %v391_v54  ;;  %v424_v18 = vmul.f32 %v415_v13, %v389_v12 }
  0x1e   : > { %v454_v23 = vmul.f32 %v445_v16, %v366_v10 }
  0x1f   : > { %v458_v3 = vadd.f32 %v455_v55, %v425_v57  ;;  %v459_v4 = vadd.f32 %v456_v56, %v426_v58 }
  0x20   : > { %v457_v25 = vadd.f32 %v454_v23, %v424_v18 }
  0x21   : > { %v491_v14 = vadd.f32 %v488_v59, %v458_v3  ;;  %v492_v15 = vadd.f32 %v489_v60, %v459_v4 }
  0x22   : > { %v490_v27 = vadd.f32 %v487_v2, %v457_v25 }
  0x23   : > { %v510_v21 = vadd.f32 %v501_v19, %v491_v14  ;;  %v511_v22 = vadd.f32 %v505_v48, %v492_v15 }
  0x24   : > { %v509_v9 = vadd.f32 %v497_v1, %v490_v27 }
  0x25   : > { %v512_v24 = vmul.f32 %v511_v22, %v510_v21 }
  0x26   : > { %v515_v11 = vpack.c.bf16 %v509_v9, %v509_v9 }
  0x27   : > { %v513_v26 = vpack.c.bf16 %v512_v24, %v512_v24 }
  0x28   : > { %516 = vst [vmem:[%s330_s16] sm:$0xf] %v515_v11 }
  0x29   : > { %514 = vst [vmem:[%s323_s13] sm:$0xf] %v513_v26 }
  0x2a PF: > { %s16_s20 = sadd.s32 1, %s717_s20   ;;  %s880_s18 = smov %s713_s19 }
  0x2b   : > { %p13_p5 = scmp.ge.s32.totalorder %s16_s20, 4   ;;  %s881_s19 = smov %s883_s21 }
  0x2d   :  { %15 = sbr.rel (!%p13_p5) target bundleno = 2 (0x2), region = 81 }

// kernel: encoder_forward.11
= control target key start
LH: loop header
LB: loop body
LE: loop exit
PB: predicated region body
PF: predicated region fallthrough
CT: control target
= control target key end

     0   :  { %v459_v2 = vmov 0.0   ;;  %v460_v24 = vmov 0   ;;  %vm461_vm0 = vmmov 0   ;;  %v102_v57 = vlaneseq  ;;  %s612_s0 = inlined_call_operand.vmem [shape: f32[16,128], index: 0, kind: input, shape index: {}]   ;;  %s613_s3 = inlined_call_operand.vmem [shape: bf16[128,384], index: 3, kind: input, shape index: {}]   ;;  %s614_s1 = inlined_call_operand.vmem [shape: f32[1,128], index: 1, kind: input, shape index: {}]   ;;  %s615_s2 = inlined_call_operand.vmem [shape: f32[1,128], index: 2, kind: input, shape index: {}]   ;;  %s616_s4 = inlined_call_operand.vmem [shape: f32[1,384], index: 4, kind: input, shape index: {}]   ;;  %s617_s5 = inlined_call_operand.vmem [shape: bf16[16,384], index: 5, kind: output, shape index: {}]  }
   0x1   :  { %v495_v0 = vld [vmem:[%s612_s0] sm:$0xff]  ;;  %v500_v1 = vld [vmem:[%s612_s0 + $0x8] sm:$0xff]  ;;  %400 = vmatprep.subr.bf16.mxu1 %v459_v2  ;;  %v433_v12 = vld [vmem:[%s613_s3 + $0x30] ss:$12 sps:$4 sm:$0xff]   ;;  %277 = vmatprep.mubr.bf16.mxu0 %v460_v24 }
   0x2   :  { %23 = vadd.xlane.f32.xlu0 %v495_v0  ;;  %v29_v3 = vmul.f32 %v495_v0, %v495_v0  ;;  %v423_v4 = vld [vmem:[%s613_s3 + $0x4] ss:$12 sps:$4 sm:$0xff]   ;;  %v30_v5 = vmul.f32 %v500_v1, %v500_v1  ;;  %v425_v6 = vld [vmem:[%s613_s3] ss:$12 sps:$4 sm:$0xff]   ;;  %v426_v7 = vld [vmem:[%s613_s3 + $0x8] ss:$12 sps:$4 sm:$0xff]   ;;  %416 = vmatprep.mubr.msk.bf16.mxu1 %vm461_vm0, %v459_v2 }
   0x3   :  { %245 = vmatprep.subr.bf16.mxu0 %v423_v4  ;;  %401 = vmatpush3.bf16.msra.mxu1 %v426_v7  ;;  %v427_v8 = vld [vmem:[%s613_s3 + $0x1c] ss:$12 sps:$4 sm:$0xff]   ;;  %v429_v9 = vld [vmem:[%s613_s3 + $0x18] ss:$12 sps:$4 sm:$0xff]   ;;  %v430_v10 = vld [vmem:[%s613_s3 + $0x20] ss:$12 sps:$4 sm:$0xff]  }
   0x4   :  { %31 = vadd.xlane.f32.xlu1 %v29_v3  ;;  %246 = vmatpush1.bf16.msra.mxu0 %v425_v6  ;;  %v431_v11 = vld [vmem:[%s613_s3 + $0x34] ss:$12 sps:$4 sm:$0xff]   ;;  %v434_v13 = vld [vmem:[%s613_s3 + $0x38] ss:$12 sps:$4 sm:$0xff]   ;;  %v438_v16 = vld [vmem:[%s613_s3 + $0x50] ss:$12 sps:$4 sm:$0xff]  }
   0x5   :  { %402 = vmatprep.subr.bf16.mxu1 %v459_v2  ;;  %247 = vmatprep.subr.bf16.mxu0 %v427_v8  ;;  %v435_v14 = vld [vmem:[%s613_s3 + $0x4c] ss:$12 sps:$4 sm:$0xff]   ;;  %v437_v15 = vld [vmem:[%s613_s3 + $0x48] ss:$12 sps:$4 sm:$0xff]   ;;  %v439_v17 = vld [vmem:[%s613_s3 + $0x64] ss:$12 sps:$4 sm:$0xff]  }
   0x6   :  { %25 = vadd.xlane.f32.xlu0 %v500_v1  ;;  %v441_v18 = vld [vmem:[%s613_s3 + $0x60] ss:$12 sps:$4 sm:$0xff]   ;;  %v442_v19 = vld [vmem:[%s613_s3 + $0x68] ss:$12 sps:$4 sm:$0xff]   ;;  %v445_v21 = vld [vmem:[%s613_s3 + $0x78] ss:$12 sps:$4 sm:$0xff]  }
   0x7   :  { %403 = vmatpush3.bf16.msra.mxu1 %v430_v10  ;;  %v443_v20 = vld [vmem:[%s613_s3 + $0x7c] ss:$12 sps:$4 sm:$0xff]   ;;  %v446_v22 = vld [vmem:[%s613_s3 + $0x80] ss:$12 sps:$4 sm:$0xff]   ;;  %v450_v26 = vld [vmem:[%s613_s3 + $0x98] ss:$12 sps:$4 sm:$0xff]  }
   0x8   :  { %33 = vadd.xlane.f32.xlu1 %v30_v5  ;;  %248 = vmatpush1.bf16.msra.mxu0 %v429_v9  ;;  %v447_v23 = vld [vmem:[%s613_s3 + $0x94] ss:$12 sps:$4 sm:$0xff]   ;;  %v449_v25 = vld [vmem:[%s613_s3 + $0x90] ss:$12 sps:$4 sm:$0xff]   ;;  %v451_v27 = vld [vmem:[%s613_s3 + $0xac] ss:$12 sps:$4 sm:$0xff]  }
   0x9   :  { %404 = vmatprep.subr.bf16.mxu1 %v459_v2  ;;  %249 = vmatprep.subr.bf16.mxu0 %v431_v11  ;;  %v453_v28 = vld [vmem:[%s613_s3 + $0xa8] ss:$12 sps:$4 sm:$0xff]   ;;  %v454_v29 = vld [vmem:[%s613_s3 + $0xb0] ss:$12 sps:$4 sm:$0xff]   ;;  %v357_v47 = vld [vmem:[%s614_s1] ss:$0 sm:$0xff] }
   0xa   :  { %v358_v52 = vld [vmem:[%s615_s2] ss:$0 sm:$0xff]  ;;  %v103_v58 = vshrl.u32 %v102_v57, 7 }
   0xb   :  { %405 = vmatpush3.bf16.msra.mxu1 %v434_v13  ;;  %v100_v61 = vld [vmem:[%s616_s4] sm:$0x7] }
   0xc   :  { %250 = vmatpush1.bf16.msra.mxu0 %v433_v12  ;;  %406 = vmatprep.subr.bf16.mxu1 %v459_v2  ;;  %v104_v59 = vsub.s32 0, %v103_v58  ;;  %v112_v60 = vsub.s32 2, %v103_v58  ;;  %v108_v62 = vsub.s32 1, %v103_v58 }
   0xd   :  { %251 = vmatprep.subr.bf16.mxu0 %v435_v14 }
   0xe   :  { %v105_v63 = vrot.slane %v100_v61, %v104_v59 }
   0xf   :  { %407 = vmatpush3.bf16.msra.mxu1 %v438_v16 }
  0x10   :  { %252 = vmatpush1.bf16.msra.mxu0 %v437_v15  ;;  %408 = vmatprep.subr.bf16.mxu1 %v459_v2 }
  0x11   :  { %253 = vmatprep.subr.bf16.mxu0 %v439_v17 }
  0x13   :  { %409 = vmatpush3.bf16.msra.mxu1 %v442_v19 }
  0x14   :  { %254 = vmatpush1.bf16.msra.mxu0 %v441_v18  ;;  %410 = vmatprep.subr.bf16.mxu1 %v459_v2 }
  0x15   :  { %255 = vmatprep.subr.bf16.mxu0 %v443_v20 }
  0x17   :  { %411 = vmatpush3.bf16.msra.mxu1 %v446_v22 }
  0x18   :  { %256 = vmatpush1.bf16.msra.mxu0 %v445_v21  ;;  %412 = vmatprep.subr.bf16.mxu1 %v459_v2 }
  0x19   :  { %257 = vmatprep.subr.bf16.mxu0 %v447_v23 }
  0x1b   :  { %413 = vmatpush3.bf16.msra.mxu1 %v450_v26 }
  0x1c   :  { %258 = vmatpush1.bf16.msra.mxu0 %v449_v25  ;;  %414 = vmatprep.subr.bf16.mxu1 %v459_v2 }
  0x1d   :  { %259 = vmatprep.subr.bf16.mxu0 %v451_v27 }
  0x1f   :  { %415 = vmatpush3.bf16.msra.mxu1 %v454_v29 }
  0x20   :  { %260 = vmatpush1.bf16.msra.mxu0 %v453_v28 }
  0x8f   :  { %v24_v30 = vpop.xlane.xlu0 %23 }
  0x90   :  { %v27_v31 = vmul.f32 0.03125, %v24_v30 }
  0x91   :  { %v32_v32 = vpop.xlane.xlu1 %31 }
  0x92   :  { %v37_v33 = vmul.f32 %v27_v31, %v27_v31  ;;  %v35_v34 = vmul.f32 0.03125, %v32_v32  ;;  %v45_v44 = vsub.f32 %v495_v0, %v27_v31  ;;  %v113_v0 = vrot.slane %v100_v61, %v112_v60 }
  0x93   :  { %v26_v35 = vpop.xlane.xlu0 %25 }
  0x94   :  { %v39_v36 = vsub.f32 %v35_v34, %v37_v33  ;;  %v28_v37 = vmul.f32 0.03125, %v26_v35 }
  0x95   :  { %v34_v38 = vpop.xlane.xlu1 %33 }
  0x96   :  { %v41_v39 = vadd.f32 1e-05, %v39_v36  ;;  %v38_v40 = vmul.f32 %v28_v37, %v28_v37  ;;  %v36_v41 = vmul.f32 0.03125, %v34_v38  ;;  %v46_v48 = vsub.f32 %v500_v1, %v28_v37 }
  0x97   :  { %v109_v1 = vrot.slane %v100_v61, %v108_v62 }
  0x98   :  { %455 = vrsqrt.f32 %v41_v39  ;;  %v40_v42 = vsub.f32 %v36_v41, %v38_v40 }
  0x9a   :  { %v42_v43 = vadd.f32 1e-05, %v40_v42 }
  0x9c   :  { %457 = vrsqrt.f32 %v42_v43 }
  0xa2   :  { %v456_v45 = vpop.eup %455 }
  0xa3   :  { %v47_v46 = vmul.f32 %v456_v45, %v45_v44 }
  0xa5   :  { %v56_v51 = vmul.f32 %v357_v47, %v47_v46 }
  0xa6   :  { %v458_v49 = vpop.eup %457 }
  0xa7   :  { %v48_v50 = vmul.f32 %v458_v49, %v46_v48  ;;  %v65_v54 = vadd.f32 %v358_v52, %v56_v51 }
  0xa9   :  { %v57_v53 = vmul.f32 %v357_v47, %v48_v50 }
  0xab   :  { %v66_v55 = vadd.f32 %v358_v52, %v57_v53 }
  0xad   :  { %v67_v56 = vpack.c.bf16 %v66_v55, %v65_v54 }
  0xaf   :  { %278 = vmatmul.mubr.bf16.vlgmr.msra.gmra.mrb[0].mxu0 %v67_v56  ;;  %417 = vmatmul.mubr.bf16.vlgmr.msra.gmra.mrb[0].mxu1 %v67_v56 }
 0x182   :  { %v279_v2 = vpop.f32.mrb[0].mxu0  ;;  %v322_v3 = vpop.f32.mrb[0].mxu1 }
 0x183   :  { %v280_v4 = vadd.f32 %v279_v2, %v105_v63  ;;  %v323_v5 = vadd.f32 %v322_v3, %v113_v0  ;;  %v281_v6 = vpop.f32.mrb[1].mxu0  ;;  %v418_v7 = vpop.f32.mrb[1].mxu1 }
 0x184   :  { %v282_v8 = vadd.f32 %v281_v6, %v109_v1  ;;  %v283_v9 = vpop.f32.mrb[2].mxu0  ;;  %v325_v10 = vpop.f32.mrb[2].mxu1 }
 0x185   :  { %v388_v11 = vpack.c.bf16 %v323_v5, %v323_v5  ;;  %v284_v12 = vadd.f32 %v283_v9, %v105_v63  ;;  %v326_v13 = vadd.f32 %v325_v10, %v113_v0  ;;  %v285_v14 = vpop.f32.mrb[3].mxu0  ;;  %v419_v15 = vpop.f32.mrb[3].mxu1 }
 0x186   :  { %v387_v16 = vpack.c.bf16 %v282_v8, %v280_v4  ;;  %v286_v17 = vadd.f32 %v285_v14, %v109_v1 }
 0x187   :  { %350 = vst [vmem:[%s617_s5 + $0x8] sm:$0xf] %v388_v11  ;;  %v390_v18 = vpack.c.bf16 %v326_v13, %v326_v13 }
 0x188   :  { %349 = vst [vmem:[%s617_s5] sm:$0xff] %v387_v16  ;;  %v389_v19 = vpack.c.bf16 %v286_v17, %v284_v12 }
 0x189   :  { %352 = vst [vmem:[%s617_s5 + $0x14] sm:$0xf] %v390_v18 }
 0x18a   :  { %351 = vst [vmem:[%s617_s5 + $0xc] sm:$0xff] %v389_v19 }

// kernel: encoder_forward.14
= control target key start
LH: loop header
LB: loop body
LE: loop exit
PB: predicated region body
PF: predicated region fallthrough
CT: control target
= control target key end

     0   :  { %v279_v2 = vmov 0.0   ;;  %vm280_vm0 = vmmov 0   ;;  %s353_s0 = inlined_call_operand.vmem [shape: f32[16,128], index: 0, kind: input, shape index: {}]   ;;  %s354_s3 = inlined_call_operand.vmem [shape: bf16[128,128], index: 3, kind: input, shape index: {}]   ;;  %s355_s1 = inlined_call_operand.vmem [shape: f32[1,128], index: 1, kind: input, shape index: {}]   ;;  %s356_s2 = inlined_call_operand.vmem [shape: f32[1,128], index: 2, kind: input, shape index: {}]   ;;  %s357_s4 = inlined_call_operand.vmem [shape: f32[1,128], index: 4, kind: input, shape index: {}]   ;;  %s358_s5 = inlined_call_operand.vmem [shape: bf16[16,128], index: 5, kind: output, shape index: {}]  }
   0x1   :  { %v21_v0 = vld [vmem:[%s353_s0] sm:$0xff]  ;;  %v22_v1 = vld [vmem:[%s353_s0 + $0x8] sm:$0xff]  ;;  %241 = vmatprep.subr.bf16.mxu0 %v279_v2  ;;  %v265_v7 = vld [vmem:[%s354_s3 + $0x10] sm:$0xff]   ;;  %257 = vmatprep.mubr.msk.bf16.mxu0 %vm280_vm0, %v279_v2 }
   0x2   :  { %23 = vadd.xlane.f32.xlu0 %v21_v0  ;;  %v29_v3 = vmul.f32 %v21_v0, %v21_v0  ;;  %v30_v4 = vmul.f32 %v22_v1, %v22_v1  ;;  %v263_v5 = vld [vmem:[%s354_s3] sm:$0xff]   ;;  %v264_v6 = vld [vmem:[%s354_s3 + $0x8] sm:$0xff]   ;;  %v266_v8 = vld [vmem:[%s354_s3 + $0x18] sm:$0xff]  }
   0x3   :  { %242 = vmatpush3.bf16.msra.mxu0 %v263_v5  ;;  %v267_v9 = vld [vmem:[%s354_s3 + $0x20] sm:$0xff]   ;;  %v268_v10 = vld [vmem:[%s354_s3 + $0x28] sm:$0xff]   ;;  %v269_v11 = vld [vmem:[%s354_s3 + $0x30] sm:$0xff]  }
   0x4   :  { %31 = vadd.xlane.f32.xlu1 %v29_v3  ;;  %243 = vmatprep.subr.bf16.mxu0 %v279_v2  ;;  %v270_v12 = vld [vmem:[%s354_s3 + $0x38] sm:$0xff]   ;;  %v212_v30 = vld [vmem:[%s355_s1] ss:$0 sm:$0xff] }
   0x5   :  { %v213_v35 = vld [vmem:[%s356_s2] ss:$0 sm:$0xff] }
   0x6   :  { %25 = vadd.xlane.f32.xlu0 %v22_v1  ;;  %v214_v40 = vld [vmem:[%s357_s4] ss:$0 sm:$0xff] }
   0x7   :  { %244 = vmatpush3.bf16.msra.mxu0 %v264_v6 }
   0x8   :  { %33 = vadd.xlane.f32.xlu1 %v30_v4  ;;  %245 = vmatprep.subr.bf16.mxu0 %v279_v2 }
   0xb   :  { %246 = vmatpush3.bf16.msra.mxu0 %v265_v7 }
   0xc   :  { %247 = vmatprep.subr.bf16.mxu0 %v279_v2 }
   0xf   :  { %248 = vmatpush3.bf16.msra.mxu0 %v266_v8 }
  0x10   :  { %249 = vmatprep.subr.bf16.mxu0 %v279_v2 }
  0x13   :  { %250 = vmatpush3.bf16.msra.mxu0 %v267_v9 }
  0x14   :  { %251 = vmatprep.subr.bf16.mxu0 %v279_v2 }
  0x17   :  { %252 = vmatpush3.bf16.msra.mxu0 %v268_v10 }
  0x18   :  { %253 = vmatprep.subr.bf16.mxu0 %v279_v2 }
  0x1b   :  { %254 = vmatpush3.bf16.msra.mxu0 %v269_v11 }
  0x1c   :  { %255 = vmatprep.subr.bf16.mxu0 %v279_v2 }
  0x1f   :  { %256 = vmatpush3.bf16.msra.mxu0 %v270_v12 }
  0x8f   :  { %v24_v13 = vpop.xlane.xlu0 %23 }
  0x90   :  { %v27_v14 = vmul.f32 0.03125, %v24_v13 }
  0x91   :  { %v32_v15 = vpop.xlane.xlu1 %31 }
  0x92   :  { %v37_v16 = vmul.f32 %v27_v14, %v27_v14  ;;  %v35_v17 = vmul.f32 0.03125, %v32_v15  ;;  %v45_v27 = vsub.f32 %v21_v0, %v27_v14 }
  0x93   :  { %v26_v18 = vpop.xlane.xlu0 %25 }
  0x94   :  { %v39_v19 = vsub.f32 %v35_v17, %v37_v16  ;;  %v28_v20 = vmul.f32 0.03125, %v26_v18 }
  0x95   :  { %v34_v21 = vpop.xlane.xlu1 %33 }
  0x96   :  { %v41_v22 = vadd.f32 1e-05, %v39_v19  ;;  %v38_v23 = vmul.f32 %v28_v20, %v28_v20  ;;  %v36_v24 = vmul.f32 0.03125, %v34_v21  ;;  %v46_v31 = vsub.f32 %v22_v1, %v28_v20 }
  0x98   :  { %271 = vrsqrt.f32 %v41_v22  ;;  %v40_v25 = vsub.f32 %v36_v24, %v38_v23 }
  0x9a   :  { %v42_v26 = vadd.f32 1e-05, %v40_v25 }
  0x9c   :  { %273 = vrsqrt.f32 %v42_v26 }
  0xa2   :  { %v272_v28 = vpop.eup %271 }
  0xa3   :  { %v47_v29 = vmul.f32 %v272_v28, %v45_v27 }
  0xa5   :  { %v56_v34 = vmul.f32 %v212_v30, %v47_v29 }
  0xa6   :  { %v274_v32 = vpop.eup %273 }
  0xa7   :  { %v48_v33 = vmul.f32 %v274_v32, %v46_v31  ;;  %v65_v37 = vadd.f32 %v213_v35, %v56_v34 }
  0xa9   :  { %v57_v36 = vmul.f32 %v212_v30, %v48_v33 }
  0xab   :  { %v66_v38 = vadd.f32 %v213_v35, %v57_v36 }
  0xad   :  { %v67_v39 = vpack.c.bf16 %v66_v38, %v65_v37 }
  0xaf   :  { %258 = vmatmul.mubr.bf16.vlgmr.msra.gmra.mrb[0].mxu0 %v67_v39 }
 0x182   :  { %v173_v41 = vpop.f32.mrb[0].mxu0 }
 0x183   :  { %v174_v42 = vadd.f32 %v214_v40, %v173_v41  ;;  %v259_v43 = vpop.f32.mrb[1].mxu0 }
 0x184   :  { %v176_v44 = vpop.f32.mrb[2].mxu0 }
 0x185   :  { %v180_v45 = vmul.f32 %v174_v42, %v174_v42  ;;  %v177_v46 = vadd.f32 %v214_v40, %v176_v44  ;;  %v260_v47 = vpop.f32.mrb[3].mxu0 }
 0x187   :  { %v182_v48 = vmul.f32 %v180_v45, %v174_v42  ;;  %v181_v49 = vmul.f32 %v177_v46, %v177_v46 }
 0x189   :  { %v184_v50 = vmul.f32 0.044715, %v182_v48  ;;  %v183_v51 = vmul.f32 %v181_v49, %v177_v46 }
 0x18b   :  { %v186_v52 = vadd.f32 %v184_v50, %v174_v42  ;;  %v185_v53 = vmul.f32 0.044715, %v183_v51 }
 0x18d   :  { %v188_v54 = vmul.f32 0.7978846, %v186_v52  ;;  %v187_v55 = vadd.f32 %v185_v53, %v177_v46 }
 0x18f   :  { %275 = vtanh.f32 %v188_v54  ;;  %v189_v56 = vmul.f32 0.7978846, %v187_v55 }
 0x191   :  { %277 = vtanh.f32 %v189_v56 }
 0x199   :  { %v276_v57 = vpop.eup %275 }
 0x19a   :  { %v192_v58 = vadd.f32 1.0, %v276_v57 }
 0x19b   :  { %v278_v59 = vpop.eup %277 }
 0x19c   :  { %v194_v60 = vmul.f32 0.5, %v192_v58  ;;  %v193_v61 = vadd.f32 1.0, %v278_v59 }
 0x19e   :  { %v195_v62 = vmul.f32 0.5, %v193_v61  ;;  %v196_v63 = vmul.f32 %v194_v60, %v174_v42 }
 0x1a0   :  { %v197_v0 = vmul.f32 %v195_v62, %v177_v46 }
 0x1a2   :  { %v230_v1 = vpack.c.bf16 %v197_v0, %v196_v63 }
 0x1a4   :  { %231 = vst [vmem:[%s358_s5] sm:$0xff] %v230_v1  }

// kernel: encoder_forward.13
= control target key start
LH: loop header
LB: loop body
LE: loop exit
PB: predicated region body
PF: predicated region fallthrough
CT: control target
= control target key end

     0   :  { %v230_v0 = vmov 0.0   ;;  %vm231_vm0 = vmmov 0   ;;  %s326_s4 = inlined_call_operand.vmem [shape: bf16[128,128], index: 4, kind: input, shape index: {}]   ;;  %s327_s1 = inlined_call_operand.vmem [shape: bf16[16,128], index: 1, kind: input, shape index: {}]   ;;  %s328_s3 = inlined_call_operand.vmem [shape: f32[1,128], index: 3, kind: input, shape index: {}]   ;;  %s329_s0 = inlined_call_operand.vmem [shape: f32[16,128], index: 0, kind: input, shape index: {}]   ;;  %s330_s2 = inlined_call_operand.vmem [shape: bf16[16,128], index: 2, kind: input, shape index: {}]   ;;  %s331_s5 = inlined_call_operand.vmem [shape: f32[1,128], index: 5, kind: input, shape index: {}]   ;;  %s332_s6 = inlined_call_operand.vmem [shape: f32[16,128], index: 6, kind: input, shape index: {}]   ;;  %s333_s7 = inlined_call_operand.vmem [shape: f32[16,128], index: 7, kind: output, shape index: {}]  }
   0x1   :  { %200 = vmatprep.subr.bf16.mxu0 %v230_v0  ;;  %v222_v1 = vld [vmem:[%s326_s4] sm:$0xff]   ;;  %216 = vmatprep.mubr.msk.bf16.mxu0 %vm231_vm0, %v230_v0  ;;  %v223_v2 = vld [vmem:[%s326_s4 + $0x8] sm:$0xff]   ;;  %v224_v3 = vld [vmem:[%s326_s4 + $0x10] sm:$0xff]  }
   0x2   :  { %201 = vmatpush3.bf16.msra.mxu0 %v222_v1  ;;  %v225_v4 = vld [vmem:[%s326_s4 + $0x18] sm:$0xff]   ;;  %v184_v5 = vld [vmem:[%s327_s1] sm:$0xff]   ;;  %v227_v10 = vld [vmem:[%s326_s4 + $0x28] sm:$0xff]  }
   0x3   :  { %202 = vmatprep.subr.bf16.mxu0 %v230_v0  ;;  %v185_v6 = vunpack.c.l.bf16 %v184_v5  ;;  %v186_v7 = vunpack.c.h.bf16 %v184_v5  ;;  %v226_v8 = vld [vmem:[%s326_s4 + $0x20] sm:$0xff]   ;;  %v32_v14 = vld [vmem:[%s329_s0 + $0x8] sm:$0xff]  ;;  %v228_v20 = vld [vmem:[%s326_s4 + $0x30] sm:$0xff]  }
   0x4   :  { %v173_v9 = vld [vmem:[%s328_s3] ss:$0 sm:$0xff]  ;;  %v229_v23 = vld [vmem:[%s326_s4 + $0x38] sm:$0xff]   ;;  %v164_v31 = vld [vmem:[%s332_s6 + $0x8] sm:$0xff] }
   0x5   :  { %v40_v11 = vmul.f32 %v185_v6, %v173_v9  ;;  %v41_v12 = vmul.f32 %v186_v7, %v173_v9  ;;  %v31_v13 = vld [vmem:[%s329_s0] sm:$0xff] }
   0x6   :  { %203 = vmatpush3.bf16.msra.mxu0 %v223_v2  ;;  %v188_v15 = vld [vmem:[%s330_s2] sm:$0xff]  }
   0x7   :  { %204 = vmatprep.subr.bf16.mxu0 %v230_v0  ;;  %v42_v16 = vadd.f32 %v40_v11, %v31_v13  ;;  %v43_v17 = vadd.f32 %v41_v12, %v32_v14  ;;  %v189_v18 = vunpack.c.l.bf16 %v188_v15  ;;  %v190_v19 = vunpack.c.h.bf16 %v188_v15  ;;  %v174_v25 = vld [vmem:[%s331_s5] ss:$0 sm:$0xff] }
   0x8   :  { %v163_v27 = vld [vmem:[%s332_s6] sm:$0xff] }
   0x9   :  { %v48_v21 = vmul.f32 %v189_v18, %v42_v16  ;;  %v49_v22 = vmul.f32 %v190_v19, %v43_v17 }
   0xa   :  { %205 = vmatpush3.bf16.msra.mxu0 %v224_v3 }
   0xb   :  { %206 = vmatprep.subr.bf16.mxu0 %v230_v0  ;;  %v50_v24 = vpack.c.bf16 %v49_v22, %v48_v21 }
   0xe   :  { %207 = vmatpush3.bf16.msra.mxu0 %v225_v4 }
   0xf   :  { %208 = vmatprep.subr.bf16.mxu0 %v230_v0 }
  0x12   :  { %209 = vmatpush3.bf16.msra.mxu0 %v226_v8 }
  0x13   :  { %210 = vmatprep.subr.bf16.mxu0 %v230_v0 }
  0x16   :  { %211 = vmatpush3.bf16.msra.mxu0 %v227_v10 }
  0x17   :  { %212 = vmatprep.subr.bf16.mxu0 %v230_v0 }
  0x1a   :  { %213 = vmatpush3.bf16.msra.mxu0 %v228_v20 }
  0x1b   :  { %214 = vmatprep.subr.bf16.mxu0 %v230_v0 }
  0x1e   :  { %215 = vmatpush3.bf16.msra.mxu0 %v229_v23 }
  0x21   :  { %217 = vmatmul.mubr.bf16.vlgmr.msra.gmra.mrb[0].mxu0 %v50_v24 }
  0xf4   :  { %v156_v26 = vpop.f32.mrb[0].mxu0 }
  0xf5   :  { %v157_v28 = vadd.f32 %v174_v25, %v156_v26  ;;  %v218_v29 = vpop.f32.mrb[1].mxu0 }
  0xf6   :  { %v159_v30 = vpop.f32.mrb[2].mxu0 }
  0xf7   :  { %v165_v32 = vadd.f32 %v163_v27, %v157_v28  ;;  %v160_v33 = vadd.f32 %v174_v25, %v159_v30  ;;  %v219_v34 = vpop.f32.mrb[3].mxu0 }
  0xf9   :  { %167 = vst [vmem:[%s333_s7] sm:$0xff] %v165_v32  ;;  %v166_v35 = vadd.f32 %v164_v31, %v160_v33 }
  0xfb   :  { %168 = vst [vmem:[%s333_s7 + $0x8] sm:$0xff] %v166_v35 }

// kernel: encoder_forward.15
= control target key start
LH: loop header
LB: loop body
LE: loop exit
PB: predicated region body
PF: predicated region fallthrough
CT: control target
= control target key end

     0   :  { %v217_v0 = vmov 0.0   ;;  %vm218_vm0 = vmmov 0   ;;  %s286_s1 = inlined_call_operand.vmem [shape: bf16[128,128], index: 1, kind: input, shape index: {}]   ;;  %s287_s0 = inlined_call_operand.vmem [shape: bf16[16,128], index: 0, kind: input, shape index: {}]   ;;  %s288_s2 = inlined_call_operand.vmem [shape: f32[1,128], index: 2, kind: input, shape index: {}]   ;;  %s289_s3 = inlined_call_operand.vmem [shape: f32[16,128], index: 3, kind: input, shape index: {}]   ;;  %s290_s4 = inlined_call_operand.vmem [shape: f32[16,128], index: 4, kind: output, shape index: {}]  }
   0x1   :  { %186 = vmatprep.subr.bf16.mxu0 %v217_v0  ;;  %v208_v1 = vld [vmem:[%s286_s1] sm:$0xff]   ;;  %202 = vmatprep.mubr.msk.bf16.mxu0 %vm218_vm0, %v217_v0  ;;  %v209_v2 = vld [vmem:[%s286_s1 + $0x8] sm:$0xff]   ;;  %v210_v3 = vld [vmem:[%s286_s1 + $0x10] sm:$0xff]  }
   0x2   :  { %187 = vmatpush3.bf16.msra.mxu0 %v208_v1  ;;  %v211_v4 = vld [vmem:[%s286_s1 + $0x18] sm:$0xff]   ;;  %v212_v5 = vld [vmem:[%s286_s1 + $0x20] sm:$0xff]   ;;  %v213_v6 = vld [vmem:[%s286_s1 + $0x28] sm:$0xff]  }
   0x3   :  { %188 = vmatprep.subr.bf16.mxu0 %v217_v0  ;;  %v214_v7 = vld [vmem:[%s286_s1 + $0x30] sm:$0xff]   ;;  %v215_v8 = vld [vmem:[%s286_s1 + $0x38] sm:$0xff]   ;;  %v216_v9 = vld [vmem:[%s287_s0] sm:$0xff]  }
   0x4   :  { %v176_v10 = vld [vmem:[%s288_s2] ss:$0 sm:$0xff]  ;;  %v158_v16 = vld [vmem:[%s289_s3 + $0x8] sm:$0xff] }
   0x5   :  { %v157_v12 = vld [vmem:[%s289_s3] sm:$0xff] }
   0x6   :  { %189 = vmatpush3.bf16.msra.mxu0 %v209_v2 }
   0x7   :  { %190 = vmatprep.subr.bf16.mxu0 %v217_v0 }
   0xa   :  { %191 = vmatpush3.bf16.msra.mxu0 %v210_v3 }
   0xb   :  { %192 = vmatprep.subr.bf16.mxu0 %v217_v0 }
   0xe   :  { %193 = vmatpush3.bf16.msra.mxu0 %v211_v4 }
   0xf   :  { %194 = vmatprep.subr.bf16.mxu0 %v217_v0 }
  0x12   :  { %195 = vmatpush3.bf16.msra.mxu0 %v212_v5 }
  0x13   :  { %196 = vmatprep.subr.bf16.mxu0 %v217_v0 }
  0x16   :  { %197 = vmatpush3.bf16.msra.mxu0 %v213_v6 }
  0x17   :  { %198 = vmatprep.subr.bf16.mxu0 %v217_v0 }
  0x1a   :  { %199 = vmatpush3.bf16.msra.mxu0 %v214_v7 }
  0x1b   :  { %200 = vmatprep.subr.bf16.mxu0 %v217_v0 }
  0x1e   :  { %201 = vmatpush3.bf16.msra.mxu0 %v215_v8 }
  0x21   :  { %203 = vmatmul.mubr.bf16.vlgmr.msra.gmra.mrb[0].mxu0 %v216_v9 }
  0xf4   :  { %v132_v11 = vpop.f32.mrb[0].mxu0 }
  0xf5   :  { %v155_v13 = vadd.f32 %v176_v10, %v132_v11  ;;  %v204_v14 = vpop.f32.mrb[1].mxu0 }
  0xf6   :  { %v135_v15 = vpop.f32.mrb[2].mxu0 }
  0xf7   :  { %v159_v17 = vadd.f32 %v157_v12, %v155_v13  ;;  %v156_v18 = vadd.f32 %v176_v10, %v135_v15  ;;  %v205_v19 = vpop.f32.mrb[3].mxu0 }
  0xf9   :  { %161 = vst [vmem:[%s290_s4] sm:$0xff] %v159_v17  ;;  %v160_v20 = vadd.f32 %v158_v16, %v156_v18 }
  0xfb   :  { %162 = vst [vmem:[%s290_s4 + $0x8] sm:$0xff] %v160_v20 }

// kernel: encoder_forward.21
= control target key start
LH: loop header
LB: loop body
LE: loop exit
PB: predicated region body
PF: predicated region fallthrough
CT: control target
= control target key end

     0   :  { %vm16_vm0 = vcmask 1041408   ;;  %s134_s0 = inlined_call_operand.vmem [shape: f32[2,128], index: 0, kind: input, shape index: {}]   ;;  %s135_s1 = inlined_call_operand.vmem [shape: f32[1,128], index: 1, kind: input, shape index: {}]   ;;  %s136_s2 = inlined_call_operand.vmem [shape: f32[1,128], index: 2, kind: input, shape index: {}]   ;;  %s137_s3 = inlined_call_operand.hbm [shape: f32[2,128], index: 3, kind: output, shape index: {}]  }
   0x1   :  { %v15_v0 = vld [vmem:[%s134_s0] sm:$0x3] }
   0x2   :  { %8 = vsyncpa [#allocation3], 0  ;;  %v17_v1 = vsel %vm16_vm0, %v15_v0, 0.0  ;;  %v21_v2 = vmul.f32 %v15_v0, %v15_v0  ;;  %v63_v13 = vld [vmem:[%s135_s1] ss:$0 sm:$0xff]  ;;  %s92_s17 = smov [#allocation2]  }
   0x3   :  { %18 = vadd.xlane.f32.xlu0 %v17_v1  ;;  %v64_v15 = vld [vmem:[%s136_s2] ss:$0 sm:$0xff]  ;;  %s55_s18 = sshll.u32 %s92_s17, 4  ;;  %s56_s18 = int_to_ptr.vmem [resolvable:$true] %s55_s18 }
   0x4   :  { %v22_v3 = vsel %vm16_vm0, %v21_v2, 0.0  ;;  %s68_s19 = scalar_lea.vmem %s56_s18, 32  ;;  %p73_p1 = scmp.lt.s32.totalorder %s56_s18, %s56_s18 }
   0x5   :  { %p69_p0 = scmp.ne.s32.totalorder %s56_s18, %s68_s19  ;;  %p74_p2 = scmp.lt.s32.totalorder %s68_s19, %s68_s19 }
   0x7   :  { %23 = vadd.xlane.f32.xlu0 %v22_v3  ;;  %p75_p3 = por %p74_p2, %p73_p1 }
   0x9   :  { %p76_p4 = pnand %p75_p3, %p69_p0 }
  0x90   :  { %v19_v4 = vpop.xlane.xlu0 %18 }
  0x91   :  { %v20_v5 = vmul.f32 0.03125, %v19_v4 }
  0x93   :  { %v26_v7 = vmul.f32 %v20_v5, %v20_v5  ;;  %v30_v11 = vsub.f32 %v15_v0, %v20_v5 }
  0x94   :  { %v24_v6 = vpop.xlane.xlu0 %23 }
  0x95   :  { %v25_v8 = vmul.f32 0.03125, %v24_v6 }
  0x97   :  { %v27_v9 = vsub.f32 %v25_v8, %v26_v7 }
  0x99   :  { %v28_v10 = vadd.f32 1e-05, %v27_v9 }
  0x9b   :  { %66 = vrsqrt.f32 %v28_v10 }
  0xa5   :  { %v67_v12 = vpop.eup %66 }
  0xa6   :  { %v31_v14 = vmul.f32 %v67_v12, %v30_v11 }
  0xa8   :  { %v39_v16 = vmul.f32 %v63_v13, %v31_v14 }
  0xaa   :  { %v47_v17 = vadd.f32 %v64_v15, %v39_v16 }
  0xac   :  { %48 = vst [vmem:[#allocation2] sm:$0x3] %v47_v17 }
  0xad   :  { %79 = shalt.err (!%p76_p4)
}
  0xae   :  { %s80_s21 = scalar_lea.hbm %s137_s3, 32 }
  0xaf   :  { %p81_p5 = scmp.ne.s32.totalorder %s137_s3, %s80_s21  ;;  %p84_p6 = scmp.lt.u32.totalorder %s80_s21, %s137_s3 }
  0xb1   :  { %p86_p7 = pnand %p84_p6, %p81_p5 }
  0xb3   :  { %89 = shalt.err (!%p86_p7)
}
  0xb4   :  { %58 = dma.vmem_to_hbm [thread:$0]  %s56_s18, 32, %s137_s3, [#allocation3]  }
  0xb5   :  { %90 = dma.done.wait [#allocation3], 32  }
  0xb6   :  { %91 = vsyncadd [#allocation3], 4294967264 }
  0xb7   :  { %62 = vsyncpa [#allocation3], 1 }

</bundles_post_ra>
